<compile_context>
chip_gen: v7x
topology: tpu7x:2x2x1
jax: 0.10.0
libtpu: 0.0.40
codegen_flags: <defaults>
</compile_context>

<pallas_src>
import functools
import math

import jax
import jax.numpy as jnp
import numpy as np
from jax import lax
from jax.experimental import pallas as pl
from jax.experimental.pallas import tpu as pltpu


def _layer_norm(x, w, b, eps=1e-5):
    mu = jnp.mean(x, axis=-1, keepdims=True)
    var = jnp.mean((x - mu) ** 2, axis=-1, keepdims=True)
    return (x - mu) * lax.rsqrt(var + eps) * w + b


def make_kernel(n_heads, d_model):
    H = n_heads
    D = d_model
    dh = D // H
    scale = 1.0 / math.sqrt(dh)

    def kernel(x_ref, wqkv_ref, bqkv_ref, wo_ref, bo_ref,
               ln1w_ref, ln1b_ref, w1_ref, b1_ref, w2_ref, b2_ref,
               ln2w_ref, ln2b_ref, o_ref):
        # grid = (batch "parallel", layer "arbitrary")
        l = pl.program_id(1)
        S = o_ref.shape[0]

        # Prime the residual stream from the per-batch input block on layer 0.
        @pl.when(l == 0)
        def _():
            o_ref[...] = x_ref[...].astype(o_ref.dtype)

        x = o_ref[...].astype(jnp.float32)                       # (S, D) residual stream

        # In-kernel causal additive mask (key <= query allowed; == torch triu(1)
        # strict-upper mask). No dense mask input / HBM DMA needed.
        q_pos = lax.broadcasted_iota(jnp.int32, (S, S), 0)
        k_pos = lax.broadcasted_iota(jnp.int32, (S, S), 1)
        mask_bias = jnp.where(k_pos <= q_pos, 0.0, -1e30).astype(jnp.float32)[None]

        def split_heads(t):                                      # (S, D) -> (H, S, dh)
            # TODO(synk): replace the per-head lane slices + stack/concat with a
            # single reshape/transpose (pltpu.einshape) once that relayout is
            # guaranteed to lower for dh < 128; slices are the known-safe path.
            return jnp.stack([t[:, h * dh:(h + 1) * dh] for h in range(H)], axis=0)

        # ---- multi-head self-attention (per batch, per layer) ----
        qkv = jnp.dot(x.astype(jnp.bfloat16), wqkv_ref[...],
                      preferred_element_type=jnp.float32) + bqkv_ref[...]   # (S, 3D) f32
        q = qkv[:, 0:D] * scale                                  # scale folded into q
        k = qkv[:, D:2 * D]
        v = qkv[:, 2 * D:3 * D]
        qh = split_heads(q).astype(jnp.bfloat16)                 # (H, S, dh)
        kh = split_heads(k).astype(jnp.bfloat16)
        vh = split_heads(v).astype(jnp.bfloat16)

        # TODO(synk): contraction dim dh=8 under-fills the MXU; for production
        # d_model, check pl.lower_as_mlir for vmatmul vs. VPU and retile so the
        # contraction is >= 128 if needed.
        s = jnp.einsum("hqd,hkd->hqk", qh, kh,
                       preferred_element_type=jnp.float32)       # (H, S, S) f32
        s = s + mask_bias
        m = jnp.max(s, axis=-1, keepdims=True)
        p = jnp.exp(s - m)                                       # unnormalized probs (<= 1)
        denom = jnp.sum(p, axis=-1, keepdims=True)               # (H, S, 1)

        oh = jnp.einsum("hqk,hkd->hqd", p.astype(jnp.bfloat16), vh,
                        preferred_element_type=jnp.float32)      # (H, S, dh) f32
        oh = oh * pl.reciprocal(denom, approx=True)              # normalize small tensor
        heads = jnp.concatenate([oh[h] for h in range(H)], axis=-1)   # (S, D)
        attn = jnp.dot(heads.astype(jnp.bfloat16), wo_ref[...],
                       preferred_element_type=jnp.float32) + bo_ref[...]
        x = _layer_norm(x + attn, ln1w_ref[...], ln1b_ref[...])

        # ---- feed-forward (dim_feedforward == d_model), ReLU ----
        h1 = jnp.dot(x.astype(jnp.bfloat16), w1_ref[...],
                     preferred_element_type=jnp.float32) + b1_ref[...]
        h1 = jnp.maximum(h1, 0.0)
        ff = jnp.dot(h1.astype(jnp.bfloat16), w2_ref[...],
                     preferred_element_type=jnp.float32) + b2_ref[...]
        x = _layer_norm(x + ff, ln2w_ref[...], ln2b_ref[...])

        # Residual stream stays resident in the (revisited) output block across
        # the layer axis; HBM writeback only happens when the batch block changes.
        # NOTE: final nn.Dropout is identity in eval mode.
        o_ref[...] = x.astype(o_ref.dtype)

    return kernel


PARAM_ORDER = ("wqkv", "bqkv", "wo", "bo", "ln1w", "ln1b",
               "w1", "b1", "w2", "b2", "ln2w", "ln2b")


@functools.partial(jax.jit, static_argnums=(3, 4))
def segment_decoder_forward(seg_start_hidden, seg_embeds, params,
                            n_layers, n_heads):
    """seg_start_hidden: (1, B, D); seg_embeds: (L, B, D) -> (1+L, B, D)."""
    x_sbd = jnp.concatenate([seg_start_hidden, seg_embeds], axis=0)      # (S, B, D)
    S, B, D = x_sbd.shape
    x_bsd = jnp.transpose(x_sbd, (1, 0, 2))                              # (B, S, D)

    kernel = make_kernel(n_heads, D)

    def w_spec(arr):
        # Stacked per-layer parameter (L, ...): stream one layer per grid step,
        # squeezing the layer dim so the kernel sees a single layer's tensor.
        trailing = arr.shape[1:]
        return pl.BlockSpec((None,) + trailing,
                            lambda b, l: (l,) + (0,) * len(trailing))

    in_specs = [pl.BlockSpec((None, S, D), lambda b, l: (b, 0, 0))]      # x, per batch
    in_specs += [w_spec(params[k]) for k in PARAM_ORDER]
    # Output block revisited across the layer axis -> residual-stream accumulator.
    out_spec = pl.BlockSpec((None, S, D), lambda b, l: (b, 0, 0))

    # Scoped-VMEM budget: double-buffered per-layer params + activations + headroom.
    w_bytes = sum(int(np.prod(params[k].shape[1:])) * params[k].dtype.itemsize
                  for k in PARAM_ORDER)
    act_bytes = 4 * (8 * S * D + n_heads * S * S * 4)
    vmem_limit = int(min(max(4 * w_bytes + act_bytes + (4 << 20), 8 << 20), 48 << 20))

    # TODO(synk): with D < 128 the output stores are masked (25% lane occupancy);
    # for production D (multiple of 128) this is a non-issue.  Also consider
    # blocking several batch elements per grid step and (on v6e) deeper weight
    # buffering (pl.Buffered(3)) once per-layer weight DMA is the bottleneck.
    out = pl.pallas_call(
        kernel,
        out_shape=jax.ShapeDtypeStruct((B, S, D), jnp.float32),
        grid=(B, n_layers),
        in_specs=in_specs,
        out_specs=out_spec,
        compiler_params=pltpu.CompilerParams(
            dimension_semantics=("parallel", "arbitrary"),
            vmem_limit_bytes=vmem_limit),
    )(x_bsd, *[params[k] for k in PARAM_ORDER])

    return jnp.transpose(out, (1, 0, 2))                                 # (S, B, D)


def gen_start_symbol_hidden(encoder_output, params):
    """tanh(Linear(encoder_output)) — plain-JAX glue (not the hot path)."""
    return jnp.tanh(encoder_output @ params["ff_w"] + params["ff_b"])


def init_params(key, n_layers, d_model):
    D = d_model
    ks = jax.random.split(key, 8)
    bf16 = jnp.bfloat16
    return {
        # MXU weights stored in bf16 once (no per-call cast, half the DMA bytes).
        "wqkv": (0.05 * jax.random.normal(ks[0], (n_layers, D, 3 * D), jnp.float32)).astype(bf16),
        "bqkv": jnp.zeros((n_layers, 1, 3 * D), jnp.float32),
        "wo":   (0.05 * jax.random.normal(ks[1], (n_layers, D, D), jnp.float32)).astype(bf16),
        "bo":   jnp.zeros((n_layers, 1, D), jnp.float32),
        "ln1w": jnp.ones((n_layers, 1, D), jnp.float32),
        "ln1b": jnp.zeros((n_layers, 1, D), jnp.float32),
        "w1":   (0.05 * jax.random.normal(ks[2], (n_layers, D, D), jnp.float32)).astype(bf16),
        "b1":   0.02 * jax.random.normal(ks[3], (n_layers, 1, D), jnp.float32),
        "w2":   (0.05 * jax.random.normal(ks[4], (n_layers, D, D), jnp.float32)).astype(bf16),
        "b2":   0.02 * jax.random.normal(ks[5], (n_layers, 1, D), jnp.float32),
        "ln2w": jnp.ones((n_layers, 1, D), jnp.float32),
        "ln2b": jnp.zeros((n_layers, 1, D), jnp.float32),
        # segment_decoder_ff (used only by gen_start_symbol_hidden)
        "ff_w": 0.05 * jax.random.normal(ks[6], (D, D), jnp.float32),
        "ff_b": 0.02 * jax.random.normal(ks[7], (D,), jnp.float32),
    }


def reference_forward(seg_start_hidden, seg_embeds, params, n_layers, n_heads):
    """Pure-JAX f32 reference of the same math (for sanity checking the kernel)."""
    x = jnp.concatenate([seg_start_hidden, seg_embeds], axis=0)   # (S, B, D)
    x = jnp.transpose(x, (1, 0, 2))                               # (B, S, D)
    B, S, D = x.shape
    dh = D // n_heads
    scale = 1.0 / math.sqrt(dh)
    masked = jnp.arange(S)[None, :] > jnp.arange(S)[:, None]
    f32 = jnp.float32
    for l in range(n_layers):
        qkv = x @ params["wqkv"][l].astype(f32) + params["bqkv"][l]
        q, k, v = qkv[..., :D], qkv[..., D:2 * D], qkv[..., 2 * D:]
        qh = q.reshape(B, S, n_heads, dh).transpose(0, 2, 1, 3)
        kh = k.reshape(B, S, n_heads, dh).transpose(0, 2, 1, 3)
        vh = v.reshape(B, S, n_heads, dh).transpose(0, 2, 1, 3)
        s = jnp.einsum("bhqd,bhkd->bhqk", qh, kh) * scale
        s = jnp.where(masked, -1e30, s)
        p = jax.nn.softmax(s, axis=-1)
        o = jnp.einsum("bhqk,bhkd->bhqd", p, vh)
        o = o.transpose(0, 2, 1, 3).reshape(B, S, D)
        o = o @ params["wo"][l].astype(f32) + params["bo"][l]
        x = _layer_norm(x + o, params["ln1w"][l], params["ln1b"][l])
        h1 = jnp.maximum(x @ params["w1"][l].astype(f32) + params["b1"][l], 0.0)
        ff = h1 @ params["w2"][l].astype(f32) + params["b2"][l]
        x = _layer_norm(x + ff, params["ln2w"][l], params["ln2b"][l])
    return jnp.transpose(x, (1, 0, 2))


if __name__ == "__main__":
    d_model, n_layers, n_heads = 32, 2, 4
    B, max_seg_len = 2, 8

    key = jax.random.PRNGKey(0)
    k_enc, k_seg, k_par = jax.random.split(key, 3)
    params = init_params(k_par, n_layers, d_model)

    encoder_output = jax.random.normal(k_enc, (1, B, d_model), jnp.float32)
    seg_embeds = jax.random.normal(k_seg, (max_seg_len, B, d_model), jnp.float32)
    seg_start_hidden = gen_start_symbol_hidden(encoder_output, params)   # (1, B, D)

    out = segment_decoder_forward(seg_start_hidden, seg_embeds, params,
                                  n_layers, n_heads)
    out = jax.block_until_ready(out)

    assert out.shape == (1 + max_seg_len, B, d_model)
    ref = reference_forward(seg_start_hidden, seg_embeds, params,
                            n_layers, n_heads)
    # bf16 MXU activation operands + approx reciprocal vs. f32 reference -> 2e-2 tol.
    np.testing.assert_allclose(np.asarray(out), np.asarray(ref),
                               atol=2e-2, rtol=2e-2)
    print("KERNEL_OK")
</pallas_src>

<mosaic_0001>
module attributes {stable_mosaic.version = 11 : i64} {
  func.func @kernel(%arg0: i32, %arg1: i32, %arg2: memref<1x9x32xf32, #tpu.memory_space<vmem>>, %arg3: memref<1x32x96xbf16, #tpu.memory_space<vmem>>, %arg4: memref<1x1x96xf32, #tpu.memory_space<vmem>>, %arg5: memref<1x32x32xbf16, #tpu.memory_space<vmem>>, %arg6: memref<1x1x32xf32, #tpu.memory_space<vmem>>, %arg7: memref<1x1x32xf32, #tpu.memory_space<vmem>>, %arg8: memref<1x1x32xf32, #tpu.memory_space<vmem>>, %arg9: memref<1x32x32xbf16, #tpu.memory_space<vmem>>, %arg10: memref<1x1x32xf32, #tpu.memory_space<vmem>>, %arg11: memref<1x32x32xbf16, #tpu.memory_space<vmem>>, %arg12: memref<1x1x32xf32, #tpu.memory_space<vmem>>, %arg13: memref<1x1x32xf32, #tpu.memory_space<vmem>>, %arg14: memref<1x1x32xf32, #tpu.memory_space<vmem>>, %arg15: memref<1x9x32xf32, #tpu.memory_space<vmem>>) attributes {dimension_semantics = [#tpu.dimension_semantics<parallel>, #tpu.dimension_semantics<arbitrary>], iteration_bounds = array<i64: 2, 2>, scalar_prefetch = 0 : i64, scratch_operands = 0 : i64, tpu.core_type = #tpu.core_type<tc>, window_params = [{transform_indices = @transform_0, window_bounds = array<i64: 1, 9, 32>}, {transform_indices = @transform_1, window_bounds = array<i64: 1, 32, 96>}, {transform_indices = @transform_2, window_bounds = array<i64: 1, 1, 96>}, {transform_indices = @transform_3, window_bounds = array<i64: 1, 32, 32>}, {transform_indices = @transform_4, window_bounds = array<i64: 1, 1, 32>}, {transform_indices = @transform_5, window_bounds = array<i64: 1, 1, 32>}, {transform_indices = @transform_6, window_bounds = array<i64: 1, 1, 32>}, {transform_indices = @transform_7, window_bounds = array<i64: 1, 32, 32>}, {transform_indices = @transform_8, window_bounds = array<i64: 1, 1, 32>}, {transform_indices = @transform_9, window_bounds = array<i64: 1, 32, 32>}, {transform_indices = @transform_10, window_bounds = array<i64: 1, 1, 32>}, {transform_indices = @transform_11, window_bounds = array<i64: 1, 1, 32>}, {transform_indices = @transform_12, window_bounds = array<i64: 1, 1, 32>}, {transform_indices = @transform_13, window_bounds = array<i64: 1, 9, 32>}]} {
    %c0_i32 = arith.constant 0 : i32
    %0 = arith.cmpi eq, %arg1, %c0_i32 : i32
    %1 = arith.extui %0 : i1 to i32
    %c0_i32_0 = arith.constant 0 : i32
    %2 = arith.cmpi ne, %1, %c0_i32_0 : i32
    scf.if %2 {
      %c0_63 = arith.constant 0 : index
      %c0_64 = arith.constant 0 : index
      %c0_65 = arith.constant 0 : index
      %162 = vector.load %arg2[%c0_63, %c0_64, %c0_65] : memref<1x9x32xf32, #tpu.memory_space<vmem>>, vector<1x9x32xf32>
      %163 = vector.shape_cast %162 : vector<1x9x32xf32> to vector<9x32xf32>
      %c0_66 = arith.constant 0 : index
      %c0_67 = arith.constant 0 : index
      %c0_68 = arith.constant 0 : index
      %164 = vector.load %arg15[%c0_66, %c0_67, %c0_68] : memref<1x9x32xf32, #tpu.memory_space<vmem>>, vector<1x9x32xf32>
      %165 = vector.shape_cast %164 : vector<1x9x32xf32> to vector<9x32xf32>
      %166 = vector.shape_cast %163 : vector<9x32xf32> to vector<1x9x32xf32>
      tpu.vector_store %arg15[%c0_66, %c0_67, %c0_68], %166 {strides = array<i32>} : memref<1x9x32xf32, #tpu.memory_space<vmem>>, vector<1x9x32xf32>,
    } else {
    }
    %c0 = arith.constant 0 : index
    %c0_1 = arith.constant 0 : index
    %c0_2 = arith.constant 0 : index
    %3 = vector.load %arg15[%c0, %c0_1, %c0_2] : memref<1x9x32xf32, #tpu.memory_space<vmem>>, vector<1x9x32xf32>
    %4 = vector.shape_cast %3 : vector<1x9x32xf32> to vector<9x32xf32>
    %5 = tpu.iota {dimensions = array<i32: 0>} : vector<9x9xi32>
    %6 = tpu.iota {dimensions = array<i32: 1>} : vector<9x9xi32>
    %7 = arith.cmpi sle, %6, %5 : vector<9x9xi32>
    %cst = arith.constant 0.000000e+00 : f32
    %cst_3 = arith.constant -1.000000e+30 : f32
    %8 = vector.broadcast %cst : f32 to vector<9x9xf32>
    %9 = vector.broadcast %cst_3 : f32 to vector<9x9xf32>
    %10 = arith.select %7, %8, %9 : vector<9x9xi1>, vector<9x9xf32>
    %11 = vector.shape_cast %10 : vector<9x9xf32> to vector<1x9x9xf32>
    %12 = arith.truncf %4 : vector<9x32xf32> to vector<9x32xbf16>
    %c0_4 = arith.constant 0 : index
    %c0_5 = arith.constant 0 : index
    %c0_6 = arith.constant 0 : index
    %13 = vector.load %arg3[%c0_4, %c0_5, %c0_6] : memref<1x32x96xbf16, #tpu.memory_space<vmem>>, vector<1x32x96xbf16>
    %14 = vector.shape_cast %13 : vector<1x32x96xbf16> to vector<32x96xbf16>
    %cst_7 = arith.constant dense<0.000000e+00> : vector<9x96xf32>
    %15 = tpu.matmul %12, %14, %cst_7 {dimension_numbers = #tpu.dot_dimension_numbers<[1], [0], [0], [1], [0, 0, 1, 1], [], []>} : vector<9x32xbf16>, vector<32x96xbf16>, vector<9x96xf32> -> vector<9x96xf32>
    %c0_8 = arith.constant 0 : index
    %c0_9 = arith.constant 0 : index
    %c0_10 = arith.constant 0 : index
    %16 = vector.load %arg4[%c0_8, %c0_9, %c0_10] : memref<1x1x96xf32, #tpu.memory_space<vmem>>, vector<1x1x96xf32>
    %17 = vector.shape_cast %16 : vector<1x1x96xf32> to vector<1x96xf32>
    %18 = vector.broadcast %17 : vector<1x96xf32> to vector<9x96xf32>
    %19 = arith.addf %15, %18 : vector<9x96xf32>
    %20 = vector.extract_strided_slice %19 {offsets = [0, 0], sizes = [9, 32], strides = [1, 1]} : vector<9x96xf32> to vector<9x32xf32>
    %cst_11 = arith.constant 0.353553385 : f32
    %21 = vector.broadcast %cst_11 : f32 to vector<9x32xf32>
    %22 = arith.mulf %20, %21 : vector<9x32xf32>
    %23 = vector.extract_strided_slice %19 {offsets = [0, 32], sizes = [9, 32], strides = [1, 1]} : vector<9x96xf32> to vector<9x32xf32>
    %24 = vector.extract_strided_slice %19 {offsets = [0, 64], sizes = [9, 32], strides = [1, 1]} : vector<9x96xf32> to vector<9x32xf32>
    %25 = vector.extract_strided_slice %22 {offsets = [0, 0], sizes = [9, 8], strides = [1, 1]} : vector<9x32xf32> to vector<9x8xf32>
    %26 = vector.extract_strided_slice %22 {offsets = [0, 8], sizes = [9, 8], strides = [1, 1]} : vector<9x32xf32> to vector<9x8xf32>
    %27 = vector.extract_strided_slice %22 {offsets = [0, 16], sizes = [9, 8], strides = [1, 1]} : vector<9x32xf32> to vector<9x8xf32>
    %28 = vector.extract_strided_slice %22 {offsets = [0, 24], sizes = [9, 8], strides = [1, 1]} : vector<9x32xf32> to vector<9x8xf32>
    %29 = vector.shape_cast %25 : vector<9x8xf32> to vector<1x9x8xf32>
    %30 = vector.shape_cast %26 : vector<9x8xf32> to vector<1x9x8xf32>
    %31 = vector.shape_cast %27 : vector<9x8xf32> to vector<1x9x8xf32>
    %32 = vector.shape_cast %28 : vector<9x8xf32> to vector<1x9x8xf32>
    %33 = tpu.concatenate %29, %30, %31, %32 in 0 : vector<1x9x8xf32>, vector<1x9x8xf32>, vector<1x9x8xf32>, vector<1x9x8xf32> -> vector<4x9x8xf32>
    %34 = arith.truncf %33 : vector<4x9x8xf32> to vector<4x9x8xbf16>
    %35 = vector.extract_strided_slice %23 {offsets = [0, 0], sizes = [9, 8], strides = [1, 1]} : vector<9x32xf32> to vector<9x8xf32>
    %36 = vector.extract_strided_slice %23 {offsets = [0, 8], sizes = [9, 8], strides = [1, 1]} : vector<9x32xf32> to vector<9x8xf32>
    %37 = vector.extract_strided_slice %23 {offsets = [0, 16], sizes = [9, 8], strides = [1, 1]} : vector<9x32xf32> to vector<9x8xf32>
    %38 = vector.extract_strided_slice %23 {offsets = [0, 24], sizes = [9, 8], strides = [1, 1]} : vector<9x32xf32> to vector<9x8xf32>
    %39 = vector.shape_cast %35 : vector<9x8xf32> to vector<1x9x8xf32>
    %40 = vector.shape_cast %36 : vector<9x8xf32> to vector<1x9x8xf32>
    %41 = vector.shape_cast %37 : vector<9x8xf32> to vector<1x9x8xf32>
    %42 = vector.shape_cast %38 : vector<9x8xf32> to vector<1x9x8xf32>
    %43 = tpu.concatenate %39, %40, %41, %42 in 0 : vector<1x9x8xf32>, vector<1x9x8xf32>, vector<1x9x8xf32>, vector<1x9x8xf32> -> vector<4x9x8xf32>
    %44 = arith.truncf %43 : vector<4x9x8xf32> to vector<4x9x8xbf16>
    %45 = vector.extract_strided_slice %24 {offsets = [0, 0], sizes = [9, 8], strides = [1, 1]} : vector<9x32xf32> to vector<9x8xf32>
    %46 = vector.extract_strided_slice %24 {offsets = [0, 8], sizes = [9, 8], strides = [1, 1]} : vector<9x32xf32> to vector<9x8xf32>
    %47 = vector.extract_strided_slice %24 {offsets = [0, 16], sizes = [9, 8], strides = [1, 1]} : vector<9x32xf32> to vector<9x8xf32>
    %48 = vector.extract_strided_slice %24 {offsets = [0, 24], sizes = [9, 8], strides = [1, 1]} : vector<9x32xf32> to vector<9x8xf32>
    %49 = vector.shape_cast %45 : vector<9x8xf32> to vector<1x9x8xf32>
    %50 = vector.shape_cast %46 : vector<9x8xf32> to vector<1x9x8xf32>
    %51 = vector.shape_cast %47 : vector<9x8xf32> to vector<1x9x8xf32>
    %52 = vector.shape_cast %48 : vector<9x8xf32> to vector<1x9x8xf32>
    %53 = tpu.concatenate %49, %50, %51, %52 in 0 : vector<1x9x8xf32>, vector<1x9x8xf32>, vector<1x9x8xf32>, vector<1x9x8xf32> -> vector<4x9x8xf32>
    %54 = arith.truncf %53 : vector<4x9x8xf32> to vector<4x9x8xbf16>
    "tpu.trace_start"() <{level = 10 : i32, message = "hqd,hkd->hqk"}> : () -> ()
    %cst_12 = arith.constant dense<0.000000e+00> : vector<4x9x9xf32>
    %55 = tpu.matmul %34, %44, %cst_12 {dimension_numbers = #tpu.dot_dimension_numbers<[2], [2], [1], [1], [0, 0, 0, 1, 1, 1], [0], [0]>} : vector<4x9x8xbf16>, vector<4x9x8xbf16>, vector<4x9x9xf32> -> vector<4x9x9xf32>
    "tpu.trace_stop"() : () -> ()
    %56 = vector.broadcast %11 : vector<1x9x9xf32> to vector<4x9x9xf32>
    %57 = arith.addf %55, %56 : vector<4x9x9xf32>
    %cst_13 = arith.constant dense<0xFF800000> : vector<4x9xf32>
    %58 = vector.multi_reduction <maximumf>, %57, %cst_13 [2] : vector<4x9x9xf32> to vector<4x9xf32>
    %59 = vector.shape_cast %58 : vector<4x9xf32> to vector<4x9x1xf32>
    %60 = vector.broadcast %59 : vector<4x9x1xf32> to vector<4x9x9xf32>
    %61 = arith.subf %57, %60 : vector<4x9x9xf32>
    %62 = math.exp %61 : vector<4x9x9xf32>
    %cst_14 = arith.constant dense<0.000000e+00> : vector<4x9xf32>
    %63 = vector.multi_reduction <add>, %62, %cst_14 [2] : vector<4x9x9xf32> to vector<4x9xf32>
    %64 = vector.shape_cast %63 : vector<4x9xf32> to vector<4x9x1xf32>
    %65 = arith.truncf %62 : vector<4x9x9xf32> to vector<4x9x9xbf16>
    "tpu.trace_start"() <{level = 10 : i32, message = "hqk,hkd->hqd"}> : () -> ()
    %cst_15 = arith.constant dense<0.000000e+00> : vector<4x9x8xf32>
    %66 = tpu.matmul %65, %54, %cst_15 {dimension_numbers = #tpu.dot_dimension_numbers<[2], [1], [1], [2], [0, 0, 0, 1, 1, 2], [0], [0]>} : vector<4x9x9xbf16>, vector<4x9x8xbf16>, vector<4x9x8xf32> -> vector<4x9x8xf32>
    "tpu.trace_stop"() : () -> ()
    %67 = tpu.reciprocal %64 {approx = true} : vector<4x9x1xf32> -> vector<4x9x1xf32>
    %68 = vector.broadcast %67 : vector<4x9x1xf32> to vector<4x9x8xf32>
    %69 = arith.mulf %66, %68 : vector<4x9x8xf32>
    %70 = vector.extract_strided_slice %69 {offsets = [0, 0, 0], sizes = [1, 9, 8], strides = [1, 1, 1]} : vector<4x9x8xf32> to vector<1x9x8xf32>
    %71 = vector.shape_cast %70 : vector<1x9x8xf32> to vector<9x8xf32>
    %72 = vector.extract_strided_slice %69 {offsets = [1, 0, 0], sizes = [1, 9, 8], strides = [1, 1, 1]} : vector<4x9x8xf32> to vector<1x9x8xf32>
    %73 = vector.shape_cast %72 : vector<1x9x8xf32> to vector<9x8xf32>
    %74 = vector.extract_strided_slice %69 {offsets = [2, 0, 0], sizes = [1, 9, 8], strides = [1, 1, 1]} : vector<4x9x8xf32> to vector<1x9x8xf32>
    %75 = vector.shape_cast %74 : vector<1x9x8xf32> to vector<9x8xf32>
    %76 = vector.extract_strided_slice %69 {offsets = [3, 0, 0], sizes = [1, 9, 8], strides = [1, 1, 1]} : vector<4x9x8xf32> to vector<1x9x8xf32>
    %77 = vector.shape_cast %76 : vector<1x9x8xf32> to vector<9x8xf32>
    %78 = tpu.concatenate %71, %73, %75, %77 in 1 : vector<9x8xf32>, vector<9x8xf32>, vector<9x8xf32>, vector<9x8xf32> -> vector<9x32xf32>
    %79 = arith.truncf %78 : vector<9x32xf32> to vector<9x32xbf16>
    %c0_16 = arith.constant 0 : index
    %c0_17 = arith.constant 0 : index
    %c0_18 = arith.constant 0 : index
    %80 = vector.load %arg5[%c0_16, %c0_17, %c0_18] : memref<1x32x32xbf16, #tpu.memory_space<vmem>>, vector<1x32x32xbf16>
    %81 = vector.shape_cast %80 : vector<1x32x32xbf16> to vector<32x32xbf16>
    %cst_19 = arith.constant dense<0.000000e+00> : vector<9x32xf32>
    %82 = tpu.matmul %79, %81, %cst_19 {dimension_numbers = #tpu.dot_dimension_numbers<[1], [0], [0], [1], [0, 0, 1, 1], [], []>} : vector<9x32xbf16>, vector<32x32xbf16>, vector<9x32xf32> -> vector<9x32xf32>
    %c0_20 = arith.constant 0 : index
    %c0_21 = arith.constant 0 : index
    %c0_22 = arith.constant 0 : index
    %83 = vector.load %arg6[%c0_20, %c0_21, %c0_22] : memref<1x1x32xf32, #tpu.memory_space<vmem>>, vector<1x1x32xf32>
    %84 = vector.shape_cast %83 : vector<1x1x32xf32> to vector<1x32xf32>
    %85 = vector.broadcast %84 : vector<1x32xf32> to vector<9x32xf32>
    %86 = arith.addf %82, %85 : vector<9x32xf32>
    %87 = arith.addf %4, %86 : vector<9x32xf32>
    %c0_23 = arith.constant 0 : index
    %c0_24 = arith.constant 0 : index
    %c0_25 = arith.constant 0 : index
    %88 = vector.load %arg7[%c0_23, %c0_24, %c0_25] : memref<1x1x32xf32, #tpu.memory_space<vmem>>, vector<1x1x32xf32>
    %89 = vector.shape_cast %88 : vector<1x1x32xf32> to vector<1x32xf32>
    %c0_26 = arith.constant 0 : index
    %c0_27 = arith.constant 0 : index
    %c0_28 = arith.constant 0 : index
    %90 = vector.load %arg8[%c0_26, %c0_27, %c0_28] : memref<1x1x32xf32, #tpu.memory_space<vmem>>, vector<1x1x32xf32>
    %91 = vector.shape_cast %90 : vector<1x1x32xf32> to vector<1x32xf32>
    %cst_29 = arith.constant dense<0.000000e+00> : vector<9xf32>
    %92 = vector.multi_reduction <add>, %87, %cst_29 [1] : vector<9x32xf32> to vector<9xf32>
    %93 = vector.shape_cast %92 : vector<9xf32> to vector<9x1xf32>
    %cst_30 = arith.constant 3.200000e+01 : f32
    %94 = vector.broadcast %cst_30 : f32 to vector<9x1xf32>
    %95 = arith.divf %93, %94 : vector<9x1xf32>
    %96 = vector.broadcast %95 : vector<9x1xf32> to vector<9x32xf32>
    %97 = arith.subf %87, %96 : vector<9x32xf32>
    %98 = arith.mulf %97, %97 : vector<9x32xf32>
    %cst_31 = arith.constant dense<0.000000e+00> : vector<9xf32>
    %99 = vector.multi_reduction <add>, %98, %cst_31 [1] : vector<9x32xf32> to vector<9xf32>
    %100 = vector.shape_cast %99 : vector<9xf32> to vector<9x1xf32>
    %cst_32 = arith.constant 3.200000e+01 : f32
    %101 = vector.broadcast %cst_32 : f32 to vector<9x1xf32>
    %102 = arith.divf %100, %101 : vector<9x1xf32>
    %103 = vector.broadcast %95 : vector<9x1xf32> to vector<9x32xf32>
    %104 = arith.subf %87, %103 : vector<9x32xf32>
    %cst_33 = arith.constant 9.99999974E-6 : f32
    %105 = vector.broadcast %cst_33 : f32 to vector<9x1xf32>
    %106 = arith.addf %102, %105 : vector<9x1xf32>
    %107 = math.rsqrt %106 : vector<9x1xf32>
    %108 = vector.broadcast %107 : vector<9x1xf32> to vector<9x32xf32>
    %109 = arith.mulf %104, %108 : vector<9x32xf32>
    %110 = vector.broadcast %89 : vector<1x32xf32> to vector<9x32xf32>
    %111 = arith.mulf %109, %110 : vector<9x32xf32>
    %112 = vector.broadcast %91 : vector<1x32xf32> to vector<9x32xf32>
    %113 = arith.addf %111, %112 : vector<9x32xf32>
    %114 = arith.truncf %113 : vector<9x32xf32> to vector<9x32xbf16>
    %c0_34 = arith.constant 0 : index
    %c0_35 = arith.constant 0 : index
    %c0_36 = arith.constant 0 : index
    %115 = vector.load %arg9[%c0_34, %c0_35, %c0_36] : memref<1x32x32xbf16, #tpu.memory_space<vmem>>, vector<1x32x32xbf16>
    %116 = vector.shape_cast %115 : vector<1x32x32xbf16> to vector<32x32xbf16>
    %cst_37 = arith.constant dense<0.000000e+00> : vector<9x32xf32>
    %117 = tpu.matmul %114, %116, %cst_37 {dimension_numbers = #tpu.dot_dimension_numbers<[1], [0], [0], [1], [0, 0, 1, 1], [], []>} : vector<9x32xbf16>, vector<32x32xbf16>, vector<9x32xf32> -> vector<9x32xf32>
    %c0_38 = arith.constant 0 : index
    %c0_39 = arith.constant 0 : index
    %c0_40 = arith.constant 0 : index
    %118 = vector.load %arg10[%c0_38, %c0_39, %c0_40] : memref<1x1x32xf32, #tpu.memory_space<vmem>>, vector<1x1x32xf32>
    %119 = vector.shape_cast %118 : vector<1x1x32xf32> to vector<1x32xf32>
    %120 = vector.broadcast %119 : vector<1x32xf32> to vector<9x32xf32>
    %121 = arith.addf %117, %120 : vector<9x32xf32>
    %cst_41 = arith.constant 0.000000e+00 : f32
    %122 = vector.broadcast %cst_41 : f32 to vector<9x32xf32>
    %123 = arith.maximumf %121, %122 : vector<9x32xf32>
    %124 = arith.truncf %123 : vector<9x32xf32> to vector<9x32xbf16>
    %c0_42 = arith.constant 0 : index
    %c0_43 = arith.constant 0 : index
    %c0_44 = arith.constant 0 : index
    %125 = vector.load %arg11[%c0_42, %c0_43, %c0_44] : memref<1x32x32xbf16, #tpu.memory_space<vmem>>, vector<1x32x32xbf16>
    %126 = vector.shape_cast %125 : vector<1x32x32xbf16> to vector<32x32xbf16>
    %cst_45 = arith.constant dense<0.000000e+00> : vector<9x32xf32>
    %127 = tpu.matmul %124, %126, %cst_45 {dimension_numbers = #tpu.dot_dimension_numbers<[1], [0], [0], [1], [0, 0, 1, 1], [], []>} : vector<9x32xbf16>, vector<32x32xbf16>, vector<9x32xf32> -> vector<9x32xf32>
    %c0_46 = arith.constant 0 : index
    %c0_47 = arith.constant 0 : index
    %c0_48 = arith.constant 0 : index
    %128 = vector.load %arg12[%c0_46, %c0_47, %c0_48] : memref<1x1x32xf32, #tpu.memory_space<vmem>>, vector<1x1x32xf32>
    %129 = vector.shape_cast %128 : vector<1x1x32xf32> to vector<1x32xf32>
    %130 = vector.broadcast %129 : vector<1x32xf32> to vector<9x32xf32>
    %131 = arith.addf %127, %130 : vector<9x32xf32>
    %132 = arith.addf %113, %131 : vector<9x32xf32>
    %c0_49 = arith.constant 0 : index
    %c0_50 = arith.constant 0 : index
    %c0_51 = arith.constant 0 : index
    %133 = vector.load %arg13[%c0_49, %c0_50, %c0_51] : memref<1x1x32xf32, #tpu.memory_space<vmem>>, vector<1x1x32xf32>
    %134 = vector.shape_cast %133 : vector<1x1x32xf32> to vector<1x32xf32>
    %c0_52 = arith.constant 0 : index
    %c0_53 = arith.constant 0 : index
    %c0_54 = arith.constant 0 : index
    %135 = vector.load %arg14[%c0_52, %c0_53, %c0_54] : memref<1x1x32xf32, #tpu.memory_space<vmem>>, vector<1x1x32xf32>
    %136 = vector.shape_cast %135 : vector<1x1x32xf32> to vector<1x32xf32>
    %cst_55 = arith.constant dense<0.000000e+00> : vector<9xf32>
    %137 = vector.multi_reduction <add>, %132, %cst_55 [1] : vector<9x32xf32> to vector<9xf32>
    %138 = vector.shape_cast %137 : vector<9xf32> to vector<9x1xf32>
    %cst_56 = arith.constant 3.200000e+01 : f32
    %139 = vector.broadcast %cst_56 : f32 to vector<9x1xf32>
    %140 = arith.divf %138, %139 : vector<9x1xf32>
    %141 = vector.broadcast %140 : vector<9x1xf32> to vector<9x32xf32>
    %142 = arith.subf %132, %141 : vector<9x32xf32>
    %143 = arith.mulf %142, %142 : vector<9x32xf32>
    %cst_57 = arith.constant dense<0.000000e+00> : vector<9xf32>
    %144 = vector.multi_reduction <add>, %143, %cst_57 [1] : vector<9x32xf32> to vector<9xf32>
    %145 = vector.shape_cast %144 : vector<9xf32> to vector<9x1xf32>
    %cst_58 = arith.constant 3.200000e+01 : f32
    %146 = vector.broadcast %cst_58 : f32 to vector<9x1xf32>
    %147 = arith.divf %145, %146 : vector<9x1xf32>
    %148 = vector.broadcast %140 : vector<9x1xf32> to vector<9x32xf32>
    %149 = arith.subf %132, %148 : vector<9x32xf32>
    %cst_59 = arith.constant 9.99999974E-6 : f32
    %150 = vector.broadcast %cst_59 : f32 to vector<9x1xf32>
    %151 = arith.addf %147, %150 : vector<9x1xf32>
    %152 = math.rsqrt %151 : vector<9x1xf32>
    %153 = vector.broadcast %152 : vector<9x1xf32> to vector<9x32xf32>
    %154 = arith.mulf %149, %153 : vector<9x32xf32>
    %155 = vector.broadcast %134 : vector<1x32xf32> to vector<9x32xf32>
    %156 = arith.mulf %154, %155 : vector<9x32xf32>
    %157 = vector.broadcast %136 : vector<1x32xf32> to vector<9x32xf32>
    %158 = arith.addf %156, %157 : vector<9x32xf32>
    %c0_60 = arith.constant 0 : index
    %c0_61 = arith.constant 0 : index
    %c0_62 = arith.constant 0 : index
    %159 = vector.load %arg15[%c0_60, %c0_61, %c0_62] : memref<1x9x32xf32, #tpu.memory_space<vmem>>, vector<1x9x32xf32>
    %160 = vector.shape_cast %159 : vector<1x9x32xf32> to vector<9x32xf32>
    %161 = vector.shape_cast %158 : vector<9x32xf32> to vector<1x9x32xf32>
    tpu.vector_store %arg15[%c0_60, %c0_61, %c0_62], %161 {strides = array<i32>} : memref<1x9x32xf32, #tpu.memory_space<vmem>>, vector<1x9x32xf32>,
    return
  }
  func.func @transform_0(%arg0: i32, %arg1: i32) -> (i32, i32, i32) {
    %c0_i32 = arith.constant 0 : i32
    %c0_i32_0 = arith.constant 0 : i32
    %c0_i32_1 = arith.constant 0 : i32
    return %arg0, %c0_i32, %c0_i32_0 : i32, i32, i32
  }
  func.func @transform_1(%arg0: i32, %arg1: i32) -> (i32, i32, i32) {
    %c0_i32 = arith.constant 0 : i32
    %c0_i32_0 = arith.constant 0 : i32
    %c0_i32_1 = arith.constant 0 : i32
    return %arg1, %c0_i32, %c0_i32_0 : i32, i32, i32
  }
  func.func @transform_2(%arg0: i32, %arg1: i32) -> (i32, i32, i32) {
    %c0_i32 = arith.constant 0 : i32
    %c0_i32_0 = arith.constant 0 : i32
    %c0_i32_1 = arith.constant 0 : i32
    return %arg1, %c0_i32, %c0_i32_0 : i32, i32, i32
  }
  func.func @transform_3(%arg0: i32, %arg1: i32) -> (i32, i32, i32) {
    %c0_i32 = arith.constant 0 : i32
    %c0_i32_0 = arith.constant 0 : i32
    %c0_i32_1 = arith.constant 0 : i32
    return %arg1, %c0_i32, %c0_i32_0 : i32, i32, i32
  }
  func.func @transform_4(%arg0: i32, %arg1: i32) -> (i32, i32, i32) {
    %c0_i32 = arith.constant 0 : i32
    %c0_i32_0 = arith.constant 0 : i32
    %c0_i32_1 = arith.constant 0 : i32
    return %arg1, %c0_i32, %c0_i32_0 : i32, i32, i32
  }
  func.func @transform_5(%arg0: i32, %arg1: i32) -> (i32, i32, i32) {
    %c0_i32 = arith.constant 0 : i32
    %c0_i32_0 = arith.constant 0 : i32
    %c0_i32_1 = arith.constant 0 : i32
    return %arg1, %c0_i32, %c0_i32_0 : i32, i32, i32
  }
  func.func @transform_6(%arg0: i32, %arg1: i32) -> (i32, i32, i32) {
    %c0_i32 = arith.constant 0 : i32
    %c0_i32_0 = arith.constant 0 : i32
    %c0_i32_1 = arith.constant 0 : i32
    return %arg1, %c0_i32, %c0_i32_0 : i32, i32, i32
  }
  func.func @transform_7(%arg0: i32, %arg1: i32) -> (i32, i32, i32) {
    %c0_i32 = arith.constant 0 : i32
    %c0_i32_0 = arith.constant 0 : i32
    %c0_i32_1 = arith.constant 0 : i32
    return %arg1, %c0_i32, %c0_i32_0 : i32, i32, i32
  }
  func.func @transform_8(%arg0: i32, %arg1: i32) -> (i32, i32, i32) {
    %c0_i32 = arith.constant 0 : i32
    %c0_i32_0 = arith.constant 0 : i32
    %c0_i32_1 = arith.constant 0 : i32
    return %arg1, %c0_i32, %c0_i32_0 : i32, i32, i32
  }
  func.func @transform_9(%arg0: i32, %arg1: i32) -> (i32, i32, i32) {
    %c0_i32 = arith.constant 0 : i32
    %c0_i32_0 = arith.constant 0 : i32
    %c0_i32_1 = arith.constant 0 : i32
    return %arg1, %c0_i32, %c0_i32_0 : i32, i32, i32
  }
  func.func @transform_10(%arg0: i32, %arg1: i32) -> (i32, i32, i32) {
    %c0_i32 = arith.constant 0 : i32
    %c0_i32_0 = arith.constant 0 : i32
    %c0_i32_1 = arith.constant 0 : i32
    return %arg1, %c0_i32, %c0_i32_0 : i32, i32, i32
  }
  func.func @transform_11(%arg0: i32, %arg1: i32) -> (i32, i32, i32) {
    %c0_i32 = arith.constant 0 : i32
    %c0_i32_0 = arith.constant 0 : i32
    %c0_i32_1 = arith.constant 0 : i32
    return %arg1, %c0_i32, %c0_i32_0 : i32, i32, i32
  }
  func.func @transform_12(%arg0: i32, %arg1: i32) -> (i32, i32, i32) {
    %c0_i32 = arith.constant 0 : i32
    %c0_i32_0 = arith.constant 0 : i32
    %c0_i32_1 = arith.constant 0 : i32
    return %arg1, %c0_i32, %c0_i32_0 : i32, i32, i32
  }
  func.func @transform_13(%arg0: i32, %arg1: i32) -> (i32, i32, i32) {
    %c0_i32 = arith.constant 0 : i32
    %c0_i32_0 = arith.constant 0 : i32
    %c0_i32_1 = arith.constant 0 : i32
    return %arg0, %c0_i32, %c0_i32_0 : i32, i32, i32
  }
}

</mosaic_0001>

<bundles_post_ra>
// kernel: segment_decoder_forward.1
= control target key start
LH: loop header
LB: loop body
LE: loop exit
PB: predicated region body
PF: predicated region fallthrough
CT: control target
= control target key end

     0   :  { %s2937_s0 = inlined_call_operand.vmem [shape: f32[2,9,32], index: 0, kind: input, shape index: {}]   ;;  %s2938_s1 = inlined_call_operand.vmem [shape: bf16[2,32,96], index: 1, kind: input, shape index: {}]   ;;  %s2939_s2 = inlined_call_operand.vmem [shape: f32[2,1,96], index: 2, kind: input, shape index: {}]   ;;  %s2940_s3 = inlined_call_operand.vmem [shape: bf16[2,32,32], index: 3, kind: input, shape index: {}]   ;;  %s2941_s4 = inlined_call_operand.vmem [shape: f32[2,1,32], index: 4, kind: input, shape index: {}]   ;;  %s2942_s5 = inlined_call_operand.vmem [shape: f32[2,1,32], index: 5, kind: input, shape index: {}]   ;;  %s2943_s6 = inlined_call_operand.vmem [shape: f32[2,1,32], index: 6, kind: input, shape index: {}]   ;;  %s2944_s7 = inlined_call_operand.vmem [shape: bf16[2,32,32], index: 7, kind: input, shape index: {}]   ;;  %s2945_s8 = inlined_call_operand.hbm [shape: f32[2,1,32], index: 8, kind: input, shape index: {}]   ;;  %s2946_s9 = inlined_call_operand.hbm [shape: bf16[2,32,32], index: 9, kind: input, shape index: {}]   ;;  %s2947_s10 = inlined_call_operand.hbm [shape: f32[2,1,32], index: 10, kind: input, shape index: {}]   ;;  %s2948_s11 = inlined_call_operand.vmem [shape: f32[2,1,32], index: 11, kind: input, shape index: {}]   ;;  %s2949_s12 = inlined_call_operand.vmem [shape: f32[2,1,32], index: 12, kind: input, shape index: {}]   ;;  %s2950_s13 = inlined_call_operand.vmem [shape: f32[2,9,32], index: 13, kind: output, shape index: {}]  }
   0x1   :  { %2963 = sst [smem:[#allocation18_spill]] %s2937_s0 }
   0x2   :  { %2964 = sst [smem:[#allocation19_spill]] %s2938_s1 }
   0x3   :  { %2965 = sst [smem:[#allocation20_spill]] %s2940_s3 }
   0x4   :  { %2966 = sst [smem:[#allocation21_spill]] %s2943_s6 }
   0x5   :  { %2967 = sst [smem:[#allocation22_spill]] %s2944_s7 }
   0x6   :  { %2968 = sst [smem:[#allocation23_spill]] %s2945_s8 }
   0x7   :  { %2969 = sst [smem:[#allocation24_spill]] %s2946_s9 }
   0x8   :  { %2970 = sst [smem:[#allocation25_spill]] %s2947_s10 }
   0x9   :  { %2971 = sst [smem:[#allocation26_spill]] %s2948_s11 }
   0xa   :  { %2972 = sst [smem:[#allocation27_spill]] %s2949_s12 }
   0xb   :  { %2973 = sst [smem:[#allocation28_spill]] %s2950_s13 }
   0xc   :  { %18 = vsyncpa [#allocation3], 0 }
   0xd   :  { %20 = vsyncpa [#allocation3 + $0x1], 0 }
   0xe   :  { %21 = vsyncpa [#allocation5], 0 }
   0xf   :  { %23 = vsyncpa [#allocation5 + $0x1], 0  ;;  %s2492_s25 = smov 0   ;;  %s2494_s26 = smov 0  }
  0x10   :  { %s2496_s27 = smov 0   ;;  %s2498_s28 = smov 0  }
  0x11   :  { %s2500_s29 = smov 0   ;;  %s2502_s30 = smov 0  }
  0x12   :  { %s2504_s14 = smov 0   ;;  %s2506_s15 = smov 0  }
  0x13 LB: > { %2974 = sst [smem:[#allocation9_spill]] %s2379_s26  ;;  %s2952_s16 = sadd.s32 4294967295, %s2403_s15   ;;  %s2403_s15 = sphi %s2506_s15, %s29_s15   ;;  %s2399_s14 = sphi %s2504_s14, %s3020_s14   ;;  %s2395_s30 = sphi %s2502_s30, %s3019_s30   ;;  %s2391_s29 = sphi %s2500_s29, %s3018_s29   ;;  %s2387_s28 = sphi %s2498_s28, %s3017_s28   ;;  %s2383_s27 = sphi %s2496_s27, %s3016_s27   ;;  %s2379_s26 = sphi %s2494_s26, %s3015_s26   ;;  %s2375_s25 = sphi %s2492_s25, %s3014_s25  }
  0x14   : > { %2975 = sst [smem:[#allocation10_spill]] %s2383_s27  ;;  %s38_s17 = sadd.s32 1, %s2395_s30 }
  0x15   : > { %2976 = sst [smem:[#allocation11_spill]] %s2395_s30  ;;  %p39_p0 = scmp.ge.s32.totalorder %s38_s17, 2 }
  0x16   : > { %2977 = sst [smem:[#allocation12_spill]] %s2399_s14  ;;  %s41_s18 = sadd.s32 1, %s2399_s14 }
  0x17   : > { %2978 = sst [smem:[#allocation13_spill]] %s2403_s15  ;;  %s256_s19 = sadd.s32 1, %s2383_s27 }
  0x18   : > { %p263_p1 = scmp.ne.s32.totalorder %s2383_s27, %s2379_s26  ;;  %s3022_s17 = smov (%p39_p0, %s38_s17), 0 }
  0x19   : > { %2979 = sst [smem:[#allocation14_spill]] %s3022_s17  ;;  %s3024_s18 = smov (!%p39_p0, %s41_s18), %s2399_s14 }
  0x1a   : > { %s253_s20 = ssub.s32 %s2395_s30, %s3022_s17  ;;  %p264_p2 = scmp.eq.s32.totalorder %s2403_s15, 0 }
  0x1b   : > { %p43_p3 = scmp.ge.s32.totalorder %s3024_s18, 2  ;;  %p254_p4 = scmp.eq.s32.totalorder %s253_s20, 0 }
  0x1c   : > { %p265_p5 = por %p264_p2, %p263_p1  ;;  %p269_p6 = scmp.ne.s32.totalorder %s2379_s26, %s2375_s25 }
  0x1d   : > { %s3026_s18 = smov (%p43_p3, %s3024_s18), 0  ;;  %p270_p7 = scmp.eq.s32.totalorder %s2952_s16, 0 }
  0x1e   : > { %2980 = sst [smem:[#allocation15_spill]] %s3026_s18  ;;  %p2071_p8 = scmp.lt.s32.totalorder %s2403_s15, 4 }
  0x1f   : > { %s2546_s21 = scalar_select %p254_p4, %s2383_s27, %s256_s19  }
  0x20   : > { %s2552_s22 = sand.u32 1, %s2383_s27   ;;  %p2554_p9 = por %p270_p7, %p269_p6 }
  0x21   : > { %2981 = sst [smem:[#allocation16_spill]] %s2546_s21  ;;  %s496_s24 = sand.u32 1, %s2403_s15  }
  0x22   : > { %s2982_s23 = scalar_select %p2554_p9, 1, 0 }
  0x23   : > { %p2559_p10 = pnand %p2071_p8, %p265_p5  ;;  %s1894_s25 = sshll.u32 %s2552_s22, 4 }
  0x24   : > { %s1941_s18 = sshll.u32 %s2395_s30, 8  ;;  %s2984_s9 = sld [smem:[#allocation24_spill]] }
  0x25   : > { %s2983_s20 = scalar_select %p2559_p10, 1, 0 }
  0x26   : > { %s500_s14 = scalar_lea.vmem [#allocation4], %s1894_s25  ;;  %s2573_s27 = scalar_lea.sflag [#allocation5], %s496_s24 }
  0x27   : > { %s507_s21 = sshll.u32 %s500_s14, 4  ;;  %p2579_p13 = pneg %p2559_p10  ;;  %s2570_s21 = int_to_ptr.vmem [resolvable:$true] %s507_s21 }
  0x2a   : > { %s2568_s16 = scalar_lea.hbm %s2984_s9, %s1941_s18  ;;  %s2248_s14 = scalar_lea.hbm %s2984_s9, 512 }
  0x2b   : > { %s2243_s13 = scalar_lea.hbm %s2568_s16, 256  ;;  %p2249_p2 = scmp.lt.u32.totalorder %s2568_s16, %s2984_s9 }
  0x2c   : > { %p2244_p12 = scmp.ne.s32.totalorder %s2568_s16, %s2243_s13  ;;  %p2250_p3 = scmp.lt.u32.totalorder %s2248_s14, %s2243_s13 }
  0x2d   : > { %p2252_p5 = scmp.lt.u32.totalorder %s2243_s13, %s2568_s16 }
  0x2e   : > { %p2246_p0 = pnand %p2579_p13, %p2244_p12  ;;  %p2251_p4 = por %p2250_p3, %p2249_p2 }
  0x30   : > { %p2247_p1 = pneg %p2246_p0  ;;  %p2253_p6 = por %p2252_p5, %p2251_p4 }
  0x32   : > { %p2254_p7 = pnand %p2253_p6, %p2247_p1 }
  0x34   : > { %2257 = shalt.err (!%p2254_p7)
}
  0x35   : > { %s2258_s24 = scalar_lea.vmem %s2570_s21, 256  ;;  %s2405_s17 = smov [#allocation4]  }
  0x36   : > { %p2259_p8 = scmp.ne.s32.totalorder %s2570_s21, %s2258_s24  ;;  %s2263_s18 = sshll.u32 %s2405_s17, 4  ;;  %s2264_s18 = int_to_ptr.vmem [resolvable:$false] %s2263_s18 }
  0x37   : > { %s2265_s25 = scalar_lea.vmem %s2264_s18, 512  ;;  %p2266_p11 = scmp.lt.s32.totalorder %s2570_s21, %s2264_s18 }
  0x38   : > { %p2261_p12 = pnand %p2259_p8, %p2579_p13  ;;  %p2267_p9 = scmp.lt.s32.totalorder %s2265_s25, %s2258_s24 }
  0x3a   : > { %p2262_p0 = pneg %p2261_p12  ;;  %p2268_p2 = por %p2267_p9, %p2266_p11 }
  0x3c   : > { %p2269_p3 = pnand %p2268_p2, %p2262_p0 }
  0x3e   : > { %2272 = shalt.err (!%p2269_p3)
}
  0x3f   : > { %s2406_s13 = smov 64   ;;  %s2407_s14 = smov 4  }
  0x40   : > { %2067 = dma.hbm_to_vmem [thread:$0]  (!%p2559_p10), %s2568_s16, 256, %s2570_s21, %s2573_s27, %s2406_s13, %s2406_s13, %s2407_s14  }
  0x41   : > { %p544_p1 = scmp.lt.s32.totalorder %s2403_s15, 5  ;;  %p2986_p4 = scmp.ge.s32.totalorder %s2403_s15, 1 }
  0x42   : > { %s2956_s24 = sshll.u32 %s2395_s30, 4  ;;  %s482_s17 = scalar_lea.vmem [#allocation2], %s2552_s22 }
  0x43   : > { %p2606_p9 = pnand %p2986_p4, %p544_p1  ;;  %s489_s18 = sshll.u32 %s482_s17, 4  ;;  %s490_s18 = int_to_ptr.vmem [resolvable:$true] %s489_s18 }
  0x44   : > { %s2988_s8 = sld [smem:[#allocation23_spill]]  ;;  %s480_s16 = scalar_lea.sflag [#allocation3], %s2552_s22 }
  0x45   : > { %s2987_s19 = scalar_select %p2606_p9, 1, 0 }
  0x4a   : > { %s2617_s11 = scalar_lea.hbm %s2988_s8, %s2956_s24  ;;  %s2278_s17 = scalar_lea.hbm %s2988_s8, 32 }
  0x4b   : > { %s2273_s21 = scalar_lea.hbm %s2617_s11, 16  ;;  %p2279_p7 = scmp.lt.u32.totalorder %s2617_s11, %s2988_s8 }
  0x4c   : > { %p2274_p11 = scmp.ne.s32.totalorder %s2617_s11, %s2273_s21  ;;  %p2280_p8 = scmp.lt.u32.totalorder %s2278_s17, %s2273_s21 }
  0x4d   : > { %p2282_p0 = scmp.lt.u32.totalorder %s2273_s21, %s2617_s11 }
  0x4e   : > { %p2276_p5 = pnand %p2274_p11, %p2579_p13  ;;  %p2281_p12 = por %p2280_p8, %p2279_p7 }
  0x50   : > { %p2277_p6 = pneg %p2276_p5  ;;  %p2283_p2 = por %p2282_p0, %p2281_p12 }
  0x52   : > { %p2284_p3 = pnand %p2283_p2, %p2277_p6 }
  0x54   : > { %2287 = shalt.err (!%p2284_p3)
}
  0x55   : > { %s2288_s9 = scalar_lea.vmem %s490_s18, 16  ;;  %s2408_s25 = smov [#allocation2]  }
  0x56   : > { %p2289_p1 = scmp.ne.s32.totalorder %s490_s18, %s2288_s9  ;;  %s2293_s24 = sshll.u32 %s2408_s25, 4  ;;  %s2294_s24 = int_to_ptr.vmem [resolvable:$false] %s2293_s24 }
  0x57   : > { %s2295_s13 = scalar_lea.vmem %s2294_s24, 32  ;;  %p2296_p5 = scmp.lt.s32.totalorder %s490_s18, %s2294_s24 }
  0x58   : > { %p2291_p4 = pnand %p2289_p1, %p2579_p13  ;;  %p2297_p9 = scmp.lt.s32.totalorder %s2295_s13, %s2288_s9 }
  0x5a   : > { %p2292_p11 = pneg %p2291_p4  ;;  %p2298_p10 = por %p2297_p9, %p2296_p5 }
  0x5c   : > { %p2299_p7 = pnand %p2298_p10, %p2292_p11 }
  0x5e   : > { %2302 = shalt.err (!%p2299_p7)
}
  0x5f   : > { %p2989_p8 = scmp.ne.s32.totalorder %s2983_s20, 0  ;;  %s2990_s6 = sshll.u32 %s2395_s30, 4 }
  0x60   : > { %s2991_s10 = sld [smem:[#allocation25_spill]]  ;;  %s520_s24 = scalar_lea.vmem [#allocation6], %s2552_s22 }
  0x61   : > { %2064 = dma.hbm_to_vmem [thread:$0]  (!%p2989_p8), %s2617_s11, 16, %s490_s18, %s480_s16  }
  0x62   : > { %s527_s17 = sshll.u32 %s520_s24, 4  ;;  %s528_s17 = int_to_ptr.vmem [resolvable:$true] %s527_s17 }
  0x66   : > { %s2642_s14 = scalar_lea.hbm %s2991_s10, %s2990_s6  ;;  %s2308_s18 = scalar_lea.hbm %s2991_s10, 32 }
  0x67   : > { %s2303_s9 = scalar_lea.hbm %s2642_s14, 16  ;;  %p2309_p12 = scmp.lt.u32.totalorder %s2642_s14, %s2991_s10 }
  0x68   : > { %p2304_p10 = scmp.ne.s32.totalorder %s2642_s14, %s2303_s9  ;;  %p2310_p0 = scmp.lt.u32.totalorder %s2308_s18, %s2303_s9 }
  0x69   : > { %p2312_p3 = scmp.lt.u32.totalorder %s2303_s9, %s2642_s14 }
  0x6a   : > { %p2306_p9 = pnand %p2304_p10, %p2579_p13  ;;  %p2311_p2 = por %p2310_p0, %p2309_p12 }
  0x6c   : > { %p2307_p6 = pneg %p2306_p9  ;;  %p2313_p1 = por %p2312_p3, %p2311_p2 }
  0x6e   : > { %p2314_p4 = pnand %p2313_p1, %p2307_p6 }
  0x70   : > { %2317 = shalt.err (!%p2314_p4)
}
  0x71   : > { %s2318_s22 = scalar_lea.vmem %s528_s17, 16  ;;  %s2409_s6 = smov [#allocation6]  }
  0x72   : > { %p2319_p11 = scmp.ne.s32.totalorder %s528_s17, %s2318_s22  ;;  %s2323_s7 = sshll.u32 %s2409_s6, 4  ;;  %s2324_s7 = int_to_ptr.vmem [resolvable:$false] %s2323_s7 }
  0x73   : > { %s2325_s21 = scalar_lea.vmem %s2324_s7, 32  ;;  %p2326_p10 = scmp.lt.s32.totalorder %s528_s17, %s2324_s7 }
  0x74   : > { %p2321_p5 = pnand %p2319_p11, %p2579_p13  ;;  %p2327_p9 = scmp.lt.s32.totalorder %s2325_s21, %s2318_s22 }
  0x76   : > { %p2322_p7 = pneg %p2321_p5  ;;  %p2328_p8 = por %p2327_p9, %p2326_p10 }
  0x78   : > { %p2329_p0 = pnand %p2328_p8, %p2322_p7 }
  0x7a   : > { %2332 = shalt.err (!%p2329_p0)
}
  0x7b   : > { %p2992_p12 = scmp.ne.s32.totalorder %s2983_s20, 0  ;;  %p2993_p6 = scmp.ne.s32.totalorder %s2987_s19, 0 }
  0x7d   : > { %2070 = dma.hbm_to_vmem [thread:$0]  (!%p2992_p12), %s2642_s14, 16, %s528_s17, %s2573_s27  }
  0x7e   : > { %548 = sbr.rel (%p2993_p6) target bundleno = 2637 (0xa4d), region = 72 }
  0x85   : > { %s2666_s12 = sand.u32 1, %s2379_s26   ;;  %p2994_p13 = scmp.ne.s32.totalorder %s2982_s23, 0 }
  0x86   : > { %s551_s24 = scalar_lea.sflag [#allocation3], %s2666_s12 }
  0x87   : > { %2366 = dma.done.wait (%p2994_p13), %s551_s24, 16  }
  0x88   : > { %2368 = vsyncadd (%p2994_p13), %s551_s24, 4294967280  ;;  %s2995_s20 = sadd.s32 4294967295, %s2403_s15   ;;  %s1899_s19 = sshll.u32 %s2666_s12, 4 }
  0x89   : > { %s558_s27 = sand.u32 1, %s2995_s20   ;;  %s2677_s17 = scalar_lea.vmem [#allocation4], %s1899_s19 }
  0x8a   : > { %s559_s14 = scalar_lea.sflag [#allocation5], %s558_s27  ;;  %2996 = sst [smem:[#allocation17_spill]] %s2677_s17 }
  0x8b   : > { %2370 = dma.done.wait (%p2994_p13), %s559_s14, 272  }
  0x8c   : > { %2372 = vsyncadd (%p2994_p13), %s559_s14, 4294967024  ;;  %p659_p8 = scmp.lt.s32.totalorder %s2391_s29, 1  ;;  %p664_p2 = scmp.lt.s32.totalorder %s2387_s28, 1 }
  0x8d   : > { %s2997_s0 = sld [smem:[#allocation18_spill]]  ;;  %s2998_s1 = sld [smem:[#allocation19_spill]] }
  0x8e   : > { %s3028_s29 = smov (!%p659_p8, %s2391_s29), 1  ;;  %s2999_s3 = sld [smem:[#allocation20_spill]] }
  0x8f   : > { %s2687_s25 = scalar_select %p664_p2, %s2387_s28, 1 }
  0x90   : > { %s1942_s11 = sshll.u32 %s3028_s29, 4  ;;  %s3000_s6 = sld [smem:[#allocation21_spill]] }
  0x91   : > { %s1943_s13 = sshll.u32 %s2687_s25, 4  ;;  %s3001_s24 = sld [smem:[#allocation22_spill]] }
  0x92   : > { %s3003_s29 = sld [smem:[#allocation27_spill]]  ;;  %s3004_s18 = sld [smem:[#allocation28_spill]] }
  0x93   : > { %s663_s16 = scalar_lea.vmem %s2997_s0, %s1942_s11  ;;  %s668_s7 = scalar_lea.vmem %s2998_s1, %s1943_s13 }
  0x94   : > { %s2703_s14 = scalar_lea.vmem %s2999_s3, %s1943_s13  ;;  %s3002_s3 = sld [smem:[#allocation26_spill]] }
  0x95   : > { %s570_s10 = scalar_lea.vmem [#allocation6], %s2666_s12  ;;  %p1910_p3 = scmp.ne.s32.totalorder %s2387_s28, 0 }
  0x96   : > { %s685_s1 = scalar_lea.vmem %s3000_s6, %s2687_s25  ;;  %v707_v0 = vld [vmem:[%s663_s16] sm:$0xff] (!%p1910_p3)  ;;  %vm709_vm0 = vcmask (!%p1910_p3), 261120   ;;  %v708_v1 = vld [vmem:[%s663_s16 + $0x8] sm:$0x1] (!%p1910_p3)  ;;  %vm711_vm1 = vcmask (!%p1910_p3), 253952  }
  0x97   : > { %s2720_s20 = scalar_lea.vmem %s3001_s24, %s1943_s13  ;;  %706 = sbr.rel (%p1910_p3) target bundleno = 158 (0x9e), region = 88 }
  0x98   : > { %s696_s8 = scalar_lea.vmem %s3003_s29, %s2687_s25  ;;  %s2733_s0 = scalar_lea.vmem %s3004_s18, %s1942_s11 }
  0x99   : > { %710 = vst.msk [vmem:[%s2733_s0] sm:$0xff] (!%p1910_p3), %vm709_vm0, %v707_v0 }
  0x9a   : > { %s693_s26 = scalar_lea.vmem %s3002_s3, %s2687_s25  ;;  %712 = vst.msk [vmem:[%s2733_s0 + $0x8] sm:$0x1] (!%p1910_p3), %vm711_vm1, %v708_v1 }
  0x9e PF: > { %v2195_v2 = vld [vmem:[%s668_s7] sm:$0xff]   ;;  %v2410_v3 = vmov 0.0   ;;  %v2196_v4 = vld [vmem:[%s668_s7 + $0x8] sm:$0xff]   ;;  %vm2411_vm2 = vmmov 0   ;;  %vm748_vm3 = vcmask 261120   ;;  %s3005_s30 = scalar_lea.vmem %s2939_s2, %s2687_s25  ;;  %s2412_s15 = smov 104   ;;  %v715_v58 = vlaneseq }
  0x9f   : > { %1975 = vmatprep.subr.bf16.mxu0 %v2410_v3  ;;  %1983 = vmatprep.subr.bf16.mxu1 %v2410_v3  ;;  %v1911_v8 = vld [vmem:[%s3005_s30] ss:$0 sm:$0xff]  ;;  %s2413_s17 = smov 120   ;;  %s2414_s11 = smov 112   ;;  %vm846_vm4 = vcmask 64512   ;;  %vm1127_vm5 = vcmask 1043456  }
  0xa0   : > { %1976 = vmatpush3.bf16.msra.mxu0 %v2195_v2  ;;  %1979 = vmatprep.mubr.msk.bf16.mxu0 %vm2411_vm2, %v2410_v3  ;;  %v2744_v5 = vld [vmem:[%s2733_s0] sm:$0xff]  ;;  %s2415_s16 = smov 96   ;;  %s2416_s13 = smov 64   ;;  %vm1128_vm6 = vcmask 1044480   ;;  %v2417_v44 = vmov 65535   ;;  %v716_v59 = vshrl.u32 %v715_v58, 7 }
  0xa1   : > { %v2747_v6 = vld [vmem:[%s2733_s0 + $0x8] sm:$0x1]  ;;  %1977 = vmatprep.subr.bf16.mxu0 %v2410_v3  ;;  %1985 = vmatprep.mubr.msk.bf16.mxu1 %vm2411_vm2, %v2410_v3  ;;  %v1129_v45 = vsel %vm1127_vm5, 4294967295, %v2417_v44  ;;  %v719_v60 = vand.u32 127, %v715_v58  ;;  %v2418_v62 = vmov -1e+30   ;;  %s3006_s24 = scalar_lea.vmem %s2941_s4, %s2687_s25  ;;  %s3008_s29 = scalar_lea.vmem %s2942_s5, %s2687_s25 }
  0xa2   : > { %v724_v7 = vpack.c.bf16 %v2747_v6, %v2744_v5  ;;  %v2785_v51 = vsel %vm1128_vm6, %v1129_v45, 0  ;;  %v717_v61 = vadd.s32 8, %v716_v59  ;;  %vm1044_vm9 = vcmask 72704   ;;  %s2419_s7 = smov 8   ;;  %s2421_s22 = smov 24  }
  0xa3   : > { %vm720_vm7 = vcmp.le.s32.totalorder %v719_v60, %v716_v59  ;;  %vm1048_vm10 = vcmask 65536   ;;  %vm1364_vm11 = vcmask 130048   ;;  %vm1367_vm12 = vcmask 195584   ;;  %s3007_s27 = sld [smem:[#allocation17_spill]]  ;;  %s3010_s3 = scalar_lea.vmem [#allocation2], %s2666_s12 }
  0xa4   : > { %1978 = vmatpush3.bf16.msra.mxu0 %v2196_v4  ;;  %vm721_vm8 = vcmp.le.s32.totalorder %v719_v60, %v717_v61  ;;  %v722_v63 = vsel %vm720_vm7, 0.0, %v2418_v62  ;;  %vm1445_vm13 = vcmask 253952  }
  0xa5   : > { %1989 = vmatprep.subr.bf16.mxu0 %v2410_v3  ;;  %v723_v1 = vsel %vm721_vm8, 0.0, %v2418_v62 }
  0xa7   : > { %1980 = vmatmul.mubr.msk.bf16.vlgmr.msra.gmra.mrb[0].mxu0 %vm748_vm3, %v724_v7 }
  0xa8   : > { %1991 = vmatprep.mubr.msk.bf16.mxu0 %vm2411_vm2, %v2410_v3 }
 0x17a   : > { %v786_v9 = vpop.f32.mrb[0].mxu0 }
 0x17b   : > { %v1981_v10 = vpop.f32.mrb[1].mxu0  ;;  %v787_v11 = vadd.f32 %v1911_v8, %v786_v9 }
 0x17c   : > { %v789_v12 = vpop.f32.mrb[2].mxu0 }
 0x17d   : > { %v790_v13 = vadd.f32 %v1911_v8, %v789_v12  ;;  %v1982_v14 = vpop.f32.mrb[3].mxu0  ;;  %v793_v17 = vmul.f32 0.35355338, %v787_v11 }
 0x17f   : > { %v2160_v15 = vpack.i.bf16 %v790_v13, %v787_v11  ;;  %v839_v16 = vpack.c.bf16 %v790_v13, %v787_v11  ;;  %v794_v18 = vmul.f32 0.35355338, %v790_v13 }
 0x181   : > { %2161 = vrot.lane.b32.xlu1 %v2160_v15, %s2412_s15  ;;  %2151 = vrot.lane.b32.xlu0 %v2160_v15, %s2413_s17  ;;  %v2165_v19 = vpack.i.bf16 %v794_v18, %v793_v17  ;;  %v815_v20 = vpack.c.bf16 %v794_v18, %v793_v17 }
 0x185   : > { %2156 = vrot.lane.b32.xlu0 %v2160_v15, %s2414_s11  ;;  %844 = vrot.lane.b32.xlu1 %v839_v16, %s2415_s16 }
 0x189   : > { %2166 = vrot.lane.b32.xlu1 %v2165_v19, %s2413_s17 }
 0x1f3   : > { %v2162_v21 = vpop.permute.xlu1 %2161  ;;  %v2152_v22 = vpop.permute.xlu0 %2151 }
 0x1f4   : > { %v2164_v23 = vunpack.i.h.bf16 %v2162_v21  ;;  %v2163_v24 = vunpack.i.l.bf16 %v2162_v21  ;;  %v2154_v25 = vunpack.i.h.bf16 %v2152_v22  ;;  %v2153_v26 = vunpack.i.l.bf16 %v2152_v22 }
 0x1f6   : > { %v2764_v27 = vpack.c.bf16 %v2164_v23, %v2163_v24  ;;  %v2766_v28 = vpack.c.bf16 %v2154_v25, %v2153_v26 }
 0x1f7   : > { %v2157_v29 = vpop.permute.xlu0 %2156  ;;  %v845_v30 = vpop.permute.xlu1 %844 }
 0x1f8   : > { %v2159_v31 = vunpack.i.h.bf16 %v2157_v29  ;;  %v2158_v32 = vunpack.i.l.bf16 %v2157_v29  ;;  %895 = vrot.lane.b32.xlu0 %v2766_v28, %s2415_s16  ;;  %995 = vrot.lane.b32.xlu1 %v2764_v27, %s2415_s16  ;;  %v851_v33 = vsel %vm846_vm4, %v845_v30, 0 }
 0x1f9   : > { %1984 = vmatpush3.bf16.xpose.msra.mxu1 %v851_v33 }
 0x1fa   : > { %v2771_v34 = vpack.c.bf16 %v2159_v31, %v2158_v32  ;;  %1995 = vmatprep.subr.bf16.mxu1 %v2410_v3 }
 0x1fb   : > { %v2167_v35 = vpop.permute.xlu1 %2166 }
 0x1fc   : > { %945 = vrot.lane.b32.xlu0 %v2771_v34, %s2415_s16  ;;  %2176 = vrot.lane.b32.xlu1 %v2165_v19, %s2412_s15  ;;  %v2169_v39 = vunpack.i.h.bf16 %v2167_v35  ;;  %v2168_v40 = vunpack.i.l.bf16 %v2167_v35 }
 0x1fe   : > { %v816_v46 = vpack.c.bf16 %v2169_v39, %v2168_v40 }
 0x200   : > { %2171 = vrot.lane.b32.xlu0 %v2165_v19, %s2414_s11  ;;  %1122 = vrot.lane.b32.xlu1 %v839_v16, %s2416_s13 }
 0x201   : > { %1986 = vmatmul.mubr.msk.bf16.vlgmr.msra.gmra.mrb[0].mxu1 %vm846_vm4, %v815_v20 }
 0x202   : > { %1997 = vmatprep.mubr.msk.bf16.mxu1 %vm2411_vm2, %v2410_v3 }
 0x26a   : > { %v896_v36 = vpop.permute.xlu0 %895  ;;  %v996_v37 = vpop.permute.xlu1 %995 }
 0x26b   : > { %v901_v38 = vsel %vm846_vm4, %v896_v36, 0  ;;  %v1001_v48 = vsel %vm846_vm4, %v996_v37, 0 }
 0x26c   : > { %1990 = vmatpush3.bf16.xpose.msra.mxu0 %v901_v38 }
 0x26d   : > { %2001 = vmatprep.subr.bf16.mxu0 %v2410_v3 }
 0x26e   : > { %v946_v41 = vpop.permute.xlu0 %945  ;;  %v2177_v42 = vpop.permute.xlu1 %2176 }
 0x26f   : > { %v951_v43 = vsel %vm846_vm4, %v946_v41, 0  ;;  %v2179_v53 = vunpack.i.h.bf16 %v2177_v42  ;;  %v2178_v54 = vunpack.i.l.bf16 %v2177_v42 }
 0x270   : > { %1996 = vmatpush3.bf16.xpose.msra.mxu1 %v951_v43 }
 0x271   : > { %2007 = vmatprep.subr.bf16.mxu1 %v2410_v3  ;;  %v818_v57 = vpack.c.bf16 %v2179_v53, %v2178_v54 }
 0x272   : > { %v2172_v47 = vpop.permute.xlu0 %2171  ;;  %v1123_v52 = vpop.permute.xlu1 %1122 }
 0x273   : > { %v2174_v49 = vunpack.i.h.bf16 %v2172_v47  ;;  %v2173_v50 = vunpack.i.l.bf16 %v2172_v47  ;;  %1992 = vmatmul.mubr.msk.bf16.vlgmr.msra.gmra.mrb[4].mxu0 %vm846_vm4, %v816_v46  ;;  %v1132_v56 = vand.u32 %v2785_v51, %v1123_v52 }
 0x274   : > { %2002 = vmatpush3.bf16.xpose.msra.mxu0 %v1001_v48  ;;  %2003 = vmatprep.mubr.msk.bf16.mxu0 %vm2411_vm2, %v2410_v3 }
 0x275   : > { %v817_v55 = vpack.c.bf16 %v2174_v49, %v2173_v50  ;;  %2013 = vmatprep.subr.bf16.mxu0 %v2410_v3 }
 0x277   : > { %1998 = vmatmul.mubr.msk.bf16.vlgmr.msra.gmra.mrb[4].mxu1 %vm846_vm4, %v817_v55 }
 0x278   : > { %2008 = vmatpush3.bf16.msra.mxu1 %v1132_v56  ;;  %2009 = vmatprep.mubr.msk.bf16.mxu1 %vm2411_vm2, %v2410_v3 }
 0x279   : > { %2019 = vmatprep.subr.bf16.mxu1 %v2410_v3 }
 0x27b   : > { %2004 = vmatmul.mubr.msk.bf16.vlgmr.msra.gmra.mrb[8].mxu0 %vm846_vm4, %v818_v57 }
 0x27c   : > { %2015 = vmatprep.mubr.msk.bf16.mxu0 %vm2411_vm2, %v2410_v3 }
 0x2d4   : > { %v887_v0 = vpop.f32.mrb[0].mxu1 }
 0x2d5   : > { %v888_v2 = vadd.f32 %v887_v0, %v722_v63  ;;  %v1987_v4 = vpop.f32.mrb[1].mxu1 }
 0x2d6   : > { %v890_v7 = vpop.f32.mrb[2].mxu1 }
 0x2d7   : > { %v891_v8 = vadd.f32 %v890_v7, %v723_v1  ;;  %v1988_v9 = vpop.f32.mrb[3].mxu1  ;;  %v1045_v10 = vsel %vm1044_vm9, %v888_v2, -inf }
 0x2d8   : > { %1046 = vmax.xlane.f32.xlu0 %v1045_v10 }
 0x2d9   : > { %v1049_v11 = vsel %vm1048_vm10, %v891_v8, -inf }
 0x2da   : > { %1050 = vmax.xlane.f32.xlu1 %v1049_v11 }
 0x346   : > { %v937_v12 = vpop.f32.mrb[4].mxu0 }
 0x347   : > { %v938_v13 = vadd.f32 %v937_v12, %v722_v63  ;;  %v1993_v14 = vpop.f32.mrb[5].mxu0 }
 0x348   : > { %v940_v15 = vpop.f32.mrb[6].mxu0 }
 0x349   : > { %v941_v16 = vadd.f32 %v940_v15, %v723_v1  ;;  %v1994_v17 = vpop.f32.mrb[7].mxu0  ;;  %v1052_v18 = vsel %vm1044_vm9, %v938_v13, -inf }
 0x34a   : > { %v987_v19 = vpop.f32.mrb[4].mxu1  ;;  %1053 = vmax.xlane.f32.xlu0 %v1052_v18 }
 0x34b   : > { %v988_v20 = vadd.f32 %v987_v19, %v722_v63  ;;  %v1999_v21 = vpop.f32.mrb[5].mxu1  ;;  %v1055_v26 = vsel %vm1048_vm10, %v941_v16, -inf }
 0x34c   : > { %v990_v22 = vpop.f32.mrb[6].mxu1 }
 0x34d   : > { %v991_v23 = vadd.f32 %v990_v22, %v723_v1  ;;  %v2000_v24 = vpop.f32.mrb[7].mxu1  ;;  %v1058_v25 = vsel %vm1044_vm9, %v988_v20, -inf }
 0x34e   : > { %1059 = vmax.xlane.f32.xlu1 %v1058_v25  ;;  %1056 = vmax.xlane.f32.xlu0 %v1055_v26  ;;  %v1037_v29 = vpop.f32.mrb[8].mxu0 }
 0x34f   : > { %v1038_v30 = vadd.f32 %v1037_v29, %v722_v63  ;;  %v2005_v31 = vpop.f32.mrb[9].mxu0  ;;  %v1061_v36 = vsel %vm1048_vm10, %v991_v23, -inf }
 0x350   : > { %v1040_v32 = vpop.f32.mrb[10].mxu0 }
 0x351   : > { %v1041_v33 = vadd.f32 %v1040_v32, %v723_v1  ;;  %v2006_v35 = vpop.f32.mrb[11].mxu0  ;;  %v1064_v37 = vsel %vm1044_vm9, %v1038_v30, -inf }
 0x352   : > { %1062 = vmax.xlane.f32.xlu0 %v1061_v36  ;;  %1065 = vmax.xlane.f32.xlu1 %v1064_v37 }
 0x353   : > { %v1067_v38 = vsel %vm1048_vm10, %v1041_v33, -inf }
 0x356   : > { %1068 = vmax.xlane.f32.xlu0 %v1067_v38  ;;  %v2197_v38 = vld [vmem:[%s2703_s14] sm:$0xff]  }
 0x363   : > { %1224 = vrot.lane.b32.xlu1 %v2771_v34, %s2416_s13 }
 0x365   : > { %v1047_v39 = vpop.xlane.xlu0 %1046 }
 0x366   : > { %v1070_v40 = vsub.f32 %v888_v2, %v1047_v39 }
 0x367   : > { %v1051_v41 = vpop.xlane.xlu1 %1050  ;;  %1273 = vrot.lane.b32.xlu1 %v2764_v27, %s2416_s13 }
 0x368   : > { %v1078_v42 = vmul.f32 1.442695, %v1070_v40  ;;  %v1071_v43 = vsub.f32 %v891_v8, %v1051_v41 }
 0x36a   : > { %v1080_v44 = vmul.f32 1.442695, %v1071_v43  ;;  %2203 = vpow2.f32 %v1078_v42 }
 0x36c   : > { %2205 = vpow2.f32 %v1080_v44  ;;  %1175 = vrot.lane.b32.xlu0 %v2766_v28, %s2416_s13  ;;  %v2198_v44 = vld [vmem:[%s2703_s14 + $0x8] sm:$0xff]   ;;  %s2420_s14 = smov 16  }
 0x374   : > { %v2813_v45 = vpop.eup %2203 }
 0x376   : > { %v2815_v46 = vpop.eup %2205 }
 0x377   : > { %v1118_v34 = vpack.c.bf16 %v2815_v46, %v2813_v45  ;;  %v1097_v24 = vsel %vm1048_vm10, %v2815_v46, 0.0 }
 0x379   : > { %2010 = vmatmul.mubr.msk.bf16.vlgmr.msra.gmra.mrb[8].mxu1 %vm1044_vm9, %v1118_v34 }
 0x37a   : > { %2021 = vmatprep.mubr.msk.bf16.mxu1 %vm2411_vm2, %v2410_v3 }
 0x3d7   : > { %v1054_v27 = vpop.xlane.xlu0 %1053 }
 0x3d8   : > { %v1072_v47 = vsub.f32 %v938_v13, %v1054_v27 }
 0x3da   : > { %v1082_v48 = vmul.f32 1.442695, %v1072_v47 }
 0x3db   : > { %v1060_v49 = vpop.xlane.xlu1 %1059  ;;  %v1057_v50 = vpop.xlane.xlu0 %1056 }
 0x3dc   : > { %2207 = vpow2.f32 %v1082_v48  ;;  %v1074_v52 = vsub.f32 %v988_v20, %v1060_v49  ;;  %v1073_v28 = vsub.f32 %v941_v16, %v1057_v50 }
 0x3de   : > { %v1086_v53 = vmul.f32 1.442695, %v1074_v52  ;;  %v1084_v54 = vmul.f32 1.442695, %v1073_v28 }
 0x3df   : > { %v1063_v55 = vpop.xlane.xlu0 %1062  ;;  %v1066_v56 = vpop.xlane.xlu1 %1065 }
 0x3e0   : > { %2209 = vpow2.f32 %v1086_v53  ;;  %v1075_v57 = vsub.f32 %v991_v23, %v1063_v55  ;;  %v1076_v58 = vsub.f32 %v1038_v30, %v1066_v56  ;;  %v1094_v23 = vsel %vm1044_vm9, %v2813_v45, 0.0 }
 0x3e1   : > { %2211 = vpow2.f32 %v1084_v54 }
 0x3e2   : > { %v1088_v59 = vmul.f32 1.442695, %v1075_v57  ;;  %v1090_v60 = vmul.f32 1.442695, %v1076_v58 }
 0x3e3   : > { %v1225_v61 = vpop.permute.xlu1 %1224  ;;  %v1069_v62 = vpop.xlane.xlu0 %1068 }
 0x3e4   : > { %2213 = vpow2.f32 %v1088_v59  ;;  %v1230_v63 = vand.u32 %v1225_v61, %v2785_v51  ;;  %v1077_v0 = vsub.f32 %v1041_v33, %v1069_v62 }
 0x3e5   : > { %2215 = vpow2.f32 %v1090_v60 }
 0x3e6   : > { %v2208_v1 = vpop.eup %2207  ;;  %v1092_v2 = vmul.f32 1.442695, %v1077_v0  ;;  %2020 = vmatpush3.bf16.msra.mxu1 %v1230_v63 }
 0x3e7   : > { %v1176_v4 = vpop.permute.xlu0 %1175  ;;  %v1100_v7 = vsel %vm1044_vm9, %v2208_v1, 0.0  ;;  %2031 = vmatprep.subr.bf16.mxu1 %v2410_v3  ;;  %v1274_v10 = vpop.permute.xlu1 %1273 }
 0x3e8   : > { %2217 = vpow2.f32 %v1092_v2  ;;  %v1181_v8 = vand.u32 %v1176_v4, %v2785_v51  ;;  %1101 = vadd.xlane.f32.xlu0 %v1100_v7  ;;  %v1279_v15 = vand.u32 %v1274_v10, %v2785_v51 }
 0x3ea   : > { %v2210_v9 = vpop.eup %2209  ;;  %2014 = vmatpush3.bf16.msra.mxu0 %v1181_v8 }
 0x3eb   : > { %v2212_v11 = vpop.eup %2211  ;;  %v1106_v12 = vsel %vm1044_vm9, %v2210_v9, 0.0  ;;  %2025 = vmatprep.subr.bf16.mxu0 %v2410_v3 }
 0x3ec   : > { %v1103_v13 = vsel %vm1048_vm10, %v2212_v11, 0.0  ;;  %1107 = vadd.xlane.f32.xlu0 %v1106_v12  ;;  %v1119_v14 = vpack.c.bf16 %v2212_v11, %v2208_v1 }
 0x3ed   : > { %1104 = vadd.xlane.f32.xlu1 %v1103_v13 }
 0x3ee   : > { %v2214_v16 = vpop.eup %2213  ;;  %2016 = vmatmul.mubr.msk.bf16.vlgmr.msra.gmra.mrb[12].mxu0 %vm1044_vm9, %v1119_v14 }
 0x3ef   : > { %v2216_v17 = vpop.eup %2215  ;;  %2026 = vmatpush3.bf16.msra.mxu0 %v1279_v15  ;;  %v1109_v18 = vsel %vm1048_vm10, %v2214_v16, 0.0  ;;  %v1120_v19 = vpack.c.bf16 %v2214_v16, %v2210_v9  ;;  %2027 = vmatprep.mubr.msk.bf16.mxu0 %vm2411_vm2, %v2410_v3 }
 0x3f0   : > { %v1112_v20 = vsel %vm1044_vm9, %v2216_v17, 0.0  ;;  %1110 = vadd.xlane.f32.xlu0 %v1109_v18  ;;  %2039 = vmatprep.subr.bf16.mxu0 %v2410_v3 }
 0x3f1   : > { %1113 = vadd.xlane.f32.xlu1 %v1112_v20  ;;  %2022 = vmatmul.mubr.msk.bf16.vlgmr.msra.gmra.mrb[12].mxu1 %vm1044_vm9, %v1120_v19 }
 0x3f2   : > { %v2218_v51 = vpop.eup %2217  ;;  %2035 = vmatprep.mubr.msk.bf16.mxu1 %vm2411_vm2, %v2410_v3  ;;  %2032 = vmatpush3.bf16.msra.mxu1 %v2197_v38 }
 0x3f3   : > { %v1115_v21 = vsel %vm1048_vm10, %v2218_v51, 0.0  ;;  %v1121_v22 = vpack.c.bf16 %v2218_v51, %v2216_v17  ;;  %2033 = vmatprep.subr.bf16.mxu1 %v2410_v3 }
 0x3f4   : > { %1116 = vadd.xlane.f32.xlu0 %v1115_v21 }
 0x3f5   : > { %1095 = vadd.xlane.f32.xlu1 %v1094_v23 }
 0x3f6   : > { %2028 = vmatmul.mubr.msk.bf16.vlgmr.msra.gmra.mrb[16].mxu0 %vm1044_vm9, %v1121_v22  ;;  %2034 = vmatpush3.bf16.msra.mxu1 %v2198_v44 }
 0x3f7   : > { %2043 = vmatprep.mubr.msk.bf16.mxu0 %vm2411_vm2, %v2410_v3  ;;  %2047 = vmatprep.subr.bf16.mxu1 %v2410_v3 }
 0x3f8   : > { %1098 = vadd.xlane.f32.xlu0 %v1097_v24 }
 0x44c   : > { %v2847_v25 = vpop.f32.mrb[8].mxu1 }
 0x44d   : > { %v2011_v26 = vpop.f32.mrb[9].mxu1 }
 0x44e   : > { %v2849_v29 = vpop.f32.mrb[10].mxu1 }
 0x44f   : > { %v2012_v30 = vpop.f32.mrb[11].mxu1 }
 0x475   : > { %v1102_v31 = vpop.xlane.xlu0 %1101 }
 0x476   : > { %2219 = vrcp.f32 %v1102_v31 }
 0x479   : > { %v1108_v32 = vpop.xlane.xlu0 %1107 }
 0x47a   : > { %v1105_v33 = vpop.xlane.xlu1 %1104 }
 0x47b   : > { %2221 = vrcp.f32 %v1105_v33 }
 0x47c   : > { %2223 = vrcp.f32 %v1108_v32 }
 0x47d   : > { %v1111_v35 = vpop.xlane.xlu0 %1110 }
 0x47e   : > { %2225 = vrcp.f32 %v1111_v35  ;;  %v1114_v36 = vpop.xlane.xlu1 %1113 }
 0x47f   : > { %2227 = vrcp.f32 %v1114_v36 }
 0x480   : > { %v2220_v40 = vpop.eup %2219 }
 0x481   : > { %v1117_v37 = vpop.xlane.xlu0 %1116 }
 0x482   : > { %2229 = vrcp.f32 %v1117_v37  ;;  %v1096_v1 = vpop.xlane.xlu1 %1095 }
 0x483   : > { %2231 = vrcp.f32 %v1096_v1  ;;  %v2202_v1 = vld [vmem:[%s3007_s27 + $0x8] sm:$0xff]  }
 0x485   : > { %v2222_v42 = vpop.eup %2221  ;;  %v1099_v2 = vpop.xlane.xlu0 %1098 }
 0x486   : > { %v2224_v47 = vpop.eup %2223  ;;  %2233 = vrcp.f32 %v1099_v2  ;;  %v1929_v2 = vld [vmem:[%s3010_s3] ss:$0 sm:$0xff] }
 0x488   : > { %v2226_v49 = vpop.eup %2225 }
 0x489   : > { %v2228_v57 = vpop.eup %2227 }
 0x48c   : > { %v2230_v59 = vpop.eup %2229 }
 0x48d   : > { %v2232_v7 = vpop.eup %2231 }
 0x48e   : > { %v1330_v14 = vmul.f32 %v2232_v7, %v2847_v25  ;;  %v1923_v25 = vld [vmem:[%s3006_s24] ss:$0 sm:$0xff] }
 0x490   : > { %v2234_v9 = vpop.eup %2233 }
 0x491   : > { %v1331_v15 = vmul.f32 %v2234_v9, %v2849_v29 }
 0x4c1   : > { %v1217_v39 = vpop.f32.mrb[12].mxu0 }
 0x4c2   : > { %v2017_v41 = vpop.f32.mrb[13].mxu0  ;;  %v1332_v45 = vmul.f32 %v2220_v40, %v1217_v39 }
 0x4c3   : > { %v1220_v43 = vpop.f32.mrb[14].mxu0 }
 0x4c4   : > { %v1333_v46 = vmul.f32 %v2222_v42, %v1220_v43  ;;  %v2018_v34 = vpop.f32.mrb[15].mxu0  ;;  %v1266_v27 = vpop.f32.mrb[12].mxu1 }
 0x4c5   : > { %v2023_v48 = vpop.f32.mrb[13].mxu1  ;;  %v1334_v28 = vmul.f32 %v2224_v47, %v1266_v27  ;;  %v2200_v27 = vld [vmem:[%s2720_s20 + $0x8] sm:$0xff]  }
 0x4c6   : > { %v2180_v50 = vpack.i.bf16 %v1333_v46, %v1332_v45  ;;  %v1269_v52 = vpop.f32.mrb[14].mxu1 }
 0x4c7   : > { %v1335_v53 = vmul.f32 %v2226_v49, %v1269_v52  ;;  %v2024_v54 = vpop.f32.mrb[15].mxu1 }
 0x4c8   : > { %2181 = vrot.lane.b32.xlu1 %v2180_v50, %s2419_s7  ;;  %v1927_v54 = vld [vmem:[%s3008_s29] ss:$0 sm:$0xff] }
 0x4c9   : > { %v2185_v55 = vpack.i.bf16 %v1335_v53, %v1334_v28  ;;  %v1315_v56 = vpop.f32.mrb[16].mxu0 }
 0x4ca   : > { %v2029_v58 = vpop.f32.mrb[17].mxu0  ;;  %v1336_v61 = vmul.f32 %v2228_v57, %v1315_v56 }
 0x4cb   : > { %v1318_v60 = vpop.f32.mrb[18].mxu0  ;;  %2186 = vrot.lane.b32.xlu0 %v2185_v55, %s2420_s14 }
 0x4cc   : > { %v1337_v62 = vmul.f32 %v2230_v59, %v1318_v60  ;;  %v2030_v63 = vpop.f32.mrb[19].mxu0  ;;  %v1928_v59 = vld [vmem:[%s685_s1] ss:$0 sm:$0xff] }
 0x4ce   : > { %v2190_v0 = vpack.i.bf16 %v1337_v62, %v1336_v61 }
 0x4d0   : > { %2191 = vrot.lane.b32.xlu1 %v2190_v0, %s2421_s22  ;;  %v2201_v0 = vld [vmem:[%s3007_s27] sm:$0xff]  }
 0x53a   : > { %v2182_v4 = vpop.permute.xlu1 %2181 }
 0x53b   : > { %v2184_v10 = vunpack.i.h.bf16 %v2182_v4  ;;  %v2183_v11 = vunpack.i.l.bf16 %v2182_v4 }
 0x53d   : > { %v2187_v8 = vpop.permute.xlu0 %2186  ;;  %v1363_v17 = vsel %vm846_vm4, %v1331_v15, %v2184_v10  ;;  %v1362_v18 = vsel %vm846_vm4, %v1330_v14, %v2183_v11  ;;  %v1933_v15 = vld [vmem:[%s570_s10] ss:$0 sm:$0xff] }
 0x53e   : > { %v2189_v12 = vunpack.i.h.bf16 %v2187_v8  ;;  %v2188_v13 = vunpack.i.l.bf16 %v2187_v8 }
 0x540   : > { %v1365_v51 = vsel %vm1364_vm11, %v1362_v18, %v2188_v13  ;;  %v1366_v21 = vsel %vm1364_vm11, %v1363_v17, %v2189_v12 }
 0x542   : > { %v2192_v16 = vpop.permute.xlu1 %2191 }
 0x543   : > { %v2194_v19 = vunpack.i.h.bf16 %v2192_v16  ;;  %v2193_v20 = vunpack.i.l.bf16 %v2192_v16 }
 0x545   : > { %v1369_v22 = vsel %vm1367_vm12, %v1366_v21, %v2194_v19  ;;  %v1368_v23 = vsel %vm1367_vm12, %v1365_v51, %v2193_v20 }
 0x546   : > { %v1370_v24 = vpack.c.bf16 %v1369_v22, %v1368_v23 }
 0x548   : > { %2036 = vmatmul.mubr.msk.bf16.vlgmr.msra.gmra.mrb[16].mxu1 %vm748_vm3, %v1370_v24 }
 0x549   : > { %2051 = vmatprep.mubr.msk.bf16.mxu1 %vm2411_vm2, %v2410_v3  ;;  %2048 = vmatpush3.bf16.msra.mxu1 %v2201_v0 }
 0x54a   : > { %2049 = vmatprep.subr.bf16.mxu1 %v2410_v3 }
 0x54d   : > { %2050 = vmatpush3.bf16.msra.mxu1 %v2202_v1 }
 0x61b   : > { %v1431_v26 = vpop.f32.mrb[16].mxu1 }
 0x61c   : > { %v1432_v29 = vadd.f32 %v1923_v25, %v1431_v26  ;;  %v2037_v30 = vpop.f32.mrb[17].mxu1 }
 0x61d   : > { %v1434_v31 = vpop.f32.mrb[18].mxu1 }
 0x61e   : > { %v1435_v32 = vadd.f32 %v1923_v25, %v1434_v31  ;;  %v2038_v33 = vpop.f32.mrb[19].mxu1  ;;  %v1438_v35 = vadd.f32 %v1432_v29, %v2744_v5 }
 0x620   : > { %v1442_v36 = vsel %vm748_vm3, %v1438_v35, 0.0  ;;  %v1439_v37 = vadd.f32 %v1435_v32, %v2747_v6  ;;  %v2199_v6 = vld [vmem:[%s2720_s20] sm:$0xff]  }
 0x621   : > { %1443 = vadd.xlane.f32.xlu1 %v1442_v36  ;;  %2040 = vmatpush3.bf16.msra.mxu0 %v2199_v6 }
 0x622   : > { %v1446_v38 = vsel %vm1445_vm13, %v1439_v37, 0.0  ;;  %2041 = vmatprep.subr.bf16.mxu0 %v2410_v3 }
 0x623   : > { %1447 = vadd.xlane.f32.xlu0 %v1446_v38 }
 0x625   : > { %2042 = vmatpush3.bf16.msra.mxu0 %v2200_v27 }
 0x6ae   : > { %v1444_v39 = vpop.xlane.xlu1 %1443 }
 0x6af   : > { %v1450_v40 = vmul.f32 0.03125, %v1444_v39 }
 0x6b0   : > { %v1448_v41 = vpop.xlane.xlu0 %1447 }
 0x6b1   : > { %v1452_v42 = vsub.f32 %v1438_v35, %v1450_v40  ;;  %v1451_v43 = vmul.f32 0.03125, %v1448_v41 }
 0x6b3   : > { %v1453_v44 = vsub.f32 %v1439_v37, %v1451_v43  ;;  %v1454_v45 = vmul.f32 %v1452_v42, %v1452_v42 }
 0x6b5   : > { %v1456_v5 = vsel %vm748_vm3, %v1454_v45, 0.0  ;;  %v1455_v46 = vmul.f32 %v1453_v44, %v1453_v44 }
 0x6b6   : > { %1457 = vadd.xlane.f32.xlu0 %v1456_v5 }
 0x6b7   : > { %v1459_v34 = vsel %vm1445_vm13, %v1455_v46, 0.0  ;;  %v1938_v46 = vld [vmem:[%s696_s8] ss:$0 sm:$0xff] }
 0x6b8   : > { %1460 = vadd.xlane.f32.xlu1 %v1459_v34 }
 0x743   : > { %v1458_v47 = vpop.xlane.xlu0 %1457 }
 0x744   : > { %v1462_v48 = vmul.f32 0.03125, %v1458_v47 }
 0x745   : > { %v1461_v49 = vpop.xlane.xlu1 %1460 }
 0x746   : > { %v1464_v50 = vadd.f32 1e-05, %v1462_v48  ;;  %v1463_v52 = vmul.f32 0.03125, %v1461_v49 }
 0x748   : > { %2235 = vrsqrt.f32 %v1464_v50  ;;  %v1465_v28 = vadd.f32 1e-05, %v1463_v52 }
 0x74a   : > { %2237 = vrsqrt.f32 %v1465_v28 }
 0x752   : > { %v2236_v53 = vpop.eup %2235 }
 0x753   : > { %v1468_v55 = vmul.f32 %v2236_v53, %v1452_v42 }
 0x754   : > { %v2238_v56 = vpop.eup %2237 }
 0x755   : > { %v1476_v57 = vmul.f32 %v1927_v54, %v1468_v55  ;;  %v1469_v58 = vmul.f32 %v2238_v56, %v1453_v44  ;;  %v1937_v44 = vld [vmem:[%s693_s26] ss:$0 sm:$0xff] }
 0x757   : > { %v1477_v60 = vmul.f32 %v1927_v54, %v1469_v58  ;;  %v1484_v61 = vadd.f32 %v1928_v59, %v1476_v57 }
 0x759   : > { %v1485_v62 = vadd.f32 %v1928_v59, %v1477_v60 }
 0x75b   : > { %v1486_v63 = vpack.c.bf16 %v1485_v62, %v1484_v61 }
 0x75d   : > { %2044 = vmatmul.mubr.msk.bf16.vlgmr.msra.gmra.mrb[20].mxu0 %vm748_vm3, %v1486_v63 }
 0x830   : > { %v1547_v4 = vpop.f32.mrb[20].mxu0 }
 0x831   : > { %v1548_v7 = vadd.f32 %v1929_v2, %v1547_v4  ;;  %v2045_v8 = vpop.f32.mrb[21].mxu0 }
 0x832   : > { %v1550_v9 = vpop.f32.mrb[22].mxu0 }
 0x833   : > { %v1551_v10 = vadd.f32 %v1929_v2, %v1550_v9  ;;  %v2046_v11 = vpop.f32.mrb[23].mxu0  ;;  %v1554_v12 = vmax.f32 %v1548_v7, 0.0 }
 0x835   : > { %v1555_v13 = vmax.f32 %v1551_v10, 0.0 }
 0x837   : > { %v1556_v14 = vpack.c.bf16 %v1555_v13, %v1554_v12 }
 0x839   : > { %2052 = vmatmul.mubr.msk.bf16.vlgmr.msra.gmra.mrb[20].mxu1 %vm748_vm3, %v1556_v14 }
 0x90c   : > { %v1617_v16 = vpop.f32.mrb[20].mxu1 }
 0x90d   : > { %v1618_v17 = vadd.f32 %v1933_v15, %v1617_v16  ;;  %v2053_v3 = vpop.f32.mrb[21].mxu1 }
 0x90e   : > { %v1620_v18 = vpop.f32.mrb[22].mxu1 }
 0x90f   : > { %v1621_v19 = vadd.f32 %v1933_v15, %v1620_v18  ;;  %v2054_v20 = vpop.f32.mrb[23].mxu1  ;;  %v1624_v51 = vadd.f32 %v1618_v17, %v1484_v61 }
 0x911   : > { %v1628_v21 = vsel %vm748_vm3, %v1624_v51, 0.0  ;;  %v1625_v22 = vadd.f32 %v1621_v19, %v1485_v62 }
 0x912   : > { %1629 = vadd.xlane.f32.xlu0 %v1628_v21 }
 0x913   : > { %v1631_v23 = vsel %vm1445_vm13, %v1625_v22, 0.0 }
 0x914   : > { %1632 = vadd.xlane.f32.xlu1 %v1631_v23 }
 0x99f   : > { %v1630_v24 = vpop.xlane.xlu0 %1629 }
 0x9a0   : > { %v1634_v25 = vmul.f32 0.03125, %v1630_v24 }
 0x9a1   : > { %v1633_v26 = vpop.xlane.xlu1 %1632 }
 0x9a2   : > { %v1636_v29 = vsub.f32 %v1624_v51, %v1634_v25  ;;  %v1635_v30 = vmul.f32 0.03125, %v1633_v26 }
 0x9a4   : > { %v1637_v31 = vsub.f32 %v1625_v22, %v1635_v30  ;;  %v1638_v32 = vmul.f32 %v1636_v29, %v1636_v29 }
 0x9a6   : > { %v1640_v33 = vsel %vm748_vm3, %v1638_v32, 0.0  ;;  %v1639_v35 = vmul.f32 %v1637_v31, %v1637_v31 }
 0x9a7   : > { %1641 = vadd.xlane.f32.xlu0 %v1640_v33 }
 0x9a8   : > { %v1643_v36 = vsel %vm1445_vm13, %v1639_v35, 0.0 }
 0x9a9   : > { %1644 = vadd.xlane.f32.xlu1 %v1643_v36 }
 0xa34   : > { %v1642_v37 = vpop.xlane.xlu0 %1641 }
 0xa35   : > { %v1646_v38 = vmul.f32 0.03125, %v1642_v37 }
 0xa36   : > { %v1645_v39 = vpop.xlane.xlu1 %1644 }
 0xa37   : > { %v1648_v40 = vadd.f32 1e-05, %v1646_v38  ;;  %v1647_v41 = vmul.f32 0.03125, %v1645_v39 }
 0xa39   : > { %2239 = vrsqrt.f32 %v1648_v40  ;;  %v1649_v42 = vadd.f32 1e-05, %v1647_v41 }
 0xa3b   : > { %2241 = vrsqrt.f32 %v1649_v42 }
 0xa43   : > { %v2240_v43 = vpop.eup %2239 }
 0xa44   : > { %v1652_v45 = vmul.f32 %v2240_v43, %v1636_v29 }
 0xa45   : > { %v2242_v5 = vpop.eup %2241 }
 0xa46   : > { %v1660_v34 = vmul.f32 %v1937_v44, %v1652_v45  ;;  %v1653_v6 = vmul.f32 %v2242_v5, %v1637_v31 }
 0xa48   : > { %v1668_v27 = vadd.f32 %v1938_v46, %v1660_v34  ;;  %v1661_v47 = vmul.f32 %v1937_v44, %v1653_v6 }
 0xa4a   : > { %1670 = vst.msk [vmem:[%s2733_s0] sm:$0xff] %vm748_vm3, %v1668_v27  ;;  %v1669_v48 = vadd.f32 %v1938_v46, %v1661_v47 }
 0xa4c   : > { %1671 = vst.msk [vmem:[%s2733_s0 + $0x8] sm:$0x1] %vm1445_vm13, %v1669_v48 }
 0xa4d PF: > { %s3013_s17 = sld [smem:[#allocation13_spill]]  ;;  %s3014_s25 = sld [smem:[#allocation9_spill]] }
 0xa4e   : > { %s3015_s26 = sld [smem:[#allocation10_spill]]  ;;  %s3016_s27 = sld [smem:[#allocation16_spill]] }
 0xa4f   : > { %s3017_s28 = sld [smem:[#allocation11_spill]]  ;;  %s3018_s29 = sld [smem:[#allocation12_spill]] }
 0xa50   : > { %s3019_s30 = sld [smem:[#allocation14_spill]]  ;;  %s3020_s14 = sld [smem:[#allocation15_spill]] }
 0xa53   : > { %s29_s15 = sadd.s32 1, %s3013_s17  }
 0xa54   : > { %p26_p1 = scmp.ge.s32.totalorder %s29_s15, 6  }
 0xa56   :  { %28 = sbr.rel (!%p26_p1) target bundleno = 19 (0x13), region = 170 }
 0xa5d   :  { %1693 = vsyncpa [#allocation3], 1 }
 0xa5e   :  { %1695 = vsyncpa [#allocation3 + $0x1], 1 }
 0xa5f   :  { %1696 = vsyncpa [#allocation5], 1 }
 0xa60   :  { %1698 = vsyncpa [#allocation5 + $0x1], 1 }

</bundles_post_ra>
